<compile_context>
chip_gen: v5e
topology: v5e:2x2
jax: 0.10.0
libtpu: 0.0.40
codegen_flags: <defaults>
</compile_context>

<pallas_src>
import math
import functools

import jax
import jax.numpy as jnp
from jax.experimental import pallas as pl
from jax.experimental.pallas import tpu as pltpu

# ---- model dims (small, synthetic) ----
SEQ = 8        # sequence length
HID = 32       # hidden size
NHEADS = 2
HEAD = HID // NHEADS
FFN = 64       # intermediate size
VOCAB = 64
EPS = 1e-12
LANE = 128     # TPU lane width; hidden/FFN/head dims are zero-padded to this

# ---- weight-blob column offsets (all 128-aligned) ----
C_TOK = 0                                  # token embedding table (vocab-padded)
C_QKV = C_TOK + LANE                       # 6 blocks: q_h0, k_h0, v_h0, q_h1, k_h1, v_h1
C_WO = C_QKV + 3 * NHEADS * LANE           # NHEADS output-projection blocks
C_W1 = C_WO + NHEADS * LANE                # FFN up-projection
C_W2 = C_W1 + LANE                         # FFN down-projection
NCOL = C_W2 + LANE                         # = 1408

# ---- vector-blob row indices (f32 (NVROWS, 128)) ----
V_POS = 0                                  # rows [0, SEQ)
V_SEG0, V_SEG1 = 8, 9
V_LNE_G, V_LNE_B = 10, 11
V_BO = 12
V_LN1_G, V_LN1_B = 13, 14
V_B1, V_B2 = 15, 16
V_LN2_G, V_LN2_B = 17, 18
V_BQKV = 19                                # 6 rows: bq_h0, bk_h0, bv_h0, bq_h1, bk_h1, bv_h1
NVROWS = 32


def _ln(x, gamma, beta):
    """LayerNorm over the HID real lanes of a (rows, 128) zero-padded slab.

    Padded lanes are exactly zero on input, so plain lane sums give the right
    statistics (divide by HID, not 128); gamma/beta are zero on padded lanes so
    the output keeps the zero-padding invariant for the next matmul.
    """
    s1 = jnp.sum(x, axis=-1, keepdims=True)
    s2 = jnp.sum(x * x, axis=-1, keepdims=True)
    mu = s1 * (1.0 / HID)
    var = jnp.maximum(s2 * (1.0 / HID) - mu * mu, 0.0)
    return (x - mu) * jax.lax.rsqrt(var + EPS) * gamma + beta


def encoder_kernel(int_ref, w_ref, v_ref, out_ref, *, batch, seq_len):
    B, S = batch, seq_len
    R = B * S

    ints = int_ref[0]                       # (3, B, S) int32
    ids, seg, mask = ints[0], ints[1], ints[2]
    vecs = v_ref[0]                         # (NVROWS, 128) f32

    pos = vecs[V_POS:V_POS + S, :]
    seg_e0 = vecs[V_SEG0:V_SEG0 + 1, :]
    seg_e1 = vecs[V_SEG1:V_SEG1 + 1, :]
    lne_g, lne_b = vecs[V_LNE_G:V_LNE_G + 1, :], vecs[V_LNE_B:V_LNE_B + 1, :]
    bo = vecs[V_BO:V_BO + 1, :]
    ln1_g, ln1_b = vecs[V_LN1_G:V_LN1_G + 1, :], vecs[V_LN1_B:V_LN1_B + 1, :]
    b1, b2 = vecs[V_B1:V_B1 + 1, :], vecs[V_B2:V_B2 + 1, :]
    ln2_g, ln2_b = vecs[V_LN2_G:V_LN2_G + 1, :], vecs[V_LN2_B:V_LN2_B + 1, :]

    # --- embeddings, in-kernel: token gather as a one-hot MXU matmul ---
    iota_v = jax.lax.broadcasted_iota(jnp.int32, (B, S, LANE), 2)
    onehot = jnp.where(ids[:, :, None] == iota_v, 1.0, 0.0)        # (B, S, 128) f32
    onehot = onehot.reshape(R, LANE).astype(jnp.bfloat16)
    x_tok = jnp.dot(onehot, w_ref[0, :, C_TOK:C_TOK + LANE],
                    preferred_element_type=jnp.float32)            # (R, 128)
    seg_f = seg.astype(jnp.float32)[:, :, None]                    # (B, S, 1)
    x_seg = (seg_e0[None] + (seg_e1 - seg_e0)[None] * seg_f).reshape(R, LANE)
    x_pos = jnp.broadcast_to(pos[None], (B, S, LANE)).reshape(R, LANE)

    x = _ln(x_tok + x_seg + x_pos, lne_g, lne_b)                   # (R, 128)

    # additive attention bias: 0 where attended, -1e9 where masked
    att_bias = (1.0 - mask.astype(jnp.float32)) * -1e9             # (B, S)

    # --- multi-head self-attention: one fused QKV matmul, per-head unroll ---
    x_bf = x.astype(jnp.bfloat16)
    qkv = jnp.dot(x_bf, w_ref[0, :, C_QKV:C_QKV + 3 * NHEADS * LANE],
                  preferred_element_type=jnp.float32)              # (R, 6*128)
    scale = 1.0 / math.sqrt(HEAD)

    attn = None
    for h in range(NHEADS):
        base = 3 * h * LANE
        bq = vecs[V_BQKV + 3 * h + 0:V_BQKV + 3 * h + 1, :]
        bk = vecs[V_BQKV + 3 * h + 1:V_BQKV + 3 * h + 2, :]
        bv = vecs[V_BQKV + 3 * h + 2:V_BQKV + 3 * h + 3, :]
        q = (qkv[:, base:base + LANE] + bq).reshape(B, S, LANE).astype(jnp.bfloat16)
        k = (qkv[:, base + LANE:base + 2 * LANE] + bk).reshape(B, S, LANE).astype(jnp.bfloat16)
        v = (qkv[:, base + 2 * LANE:base + 3 * LANE] + bv).reshape(B, S, LANE).astype(jnp.bfloat16)

        s = jnp.einsum("bid,bjd->bij", q, k,
                       preferred_element_type=jnp.float32) * scale  # (B, S, S)
        s = s + att_bias[:, None, :]
        s = s - jnp.max(s, axis=-1, keepdims=True)
        p = jnp.exp(s)
        p = p * pl.reciprocal(jnp.sum(p, axis=-1, keepdims=True), approx=True)
        ctx = jnp.einsum("bij,bjd->bid", p.astype(jnp.bfloat16), v,
                         preferred_element_type=jnp.float32)        # (B, S, 128)
        ctx = ctx.reshape(R, LANE).astype(jnp.bfloat16)
        head_out = jnp.dot(ctx, w_ref[0, :, C_WO + h * LANE:C_WO + (h + 1) * LANE],
                           preferred_element_type=jnp.float32)
        attn = head_out if attn is None else attn + head_out
    attn = attn + bo

    x1 = _ln(x + attn, ln1_g, ln1_b)

    # --- feed-forward ---
    h1 = jnp.dot(x1.astype(jnp.bfloat16), w_ref[0, :, C_W1:C_W1 + LANE],
                 preferred_element_type=jnp.float32) + b1
    h1 = jax.nn.gelu(h1)
    h2 = jnp.dot(h1.astype(jnp.bfloat16), w_ref[0, :, C_W2:C_W2 + LANE],
                 preferred_element_type=jnp.float32) + b2

    # lane-dense full-width store of the zero-padded sequence slab
    out_ref[0] = _ln(x1 + h2, ln2_g, ln2_b)


def run_encoders(encoders, representation_token_pos=0):
    """Run 1 or 2 encoders in ONE pallas_call.

    encoders: list of (packed_params, ids, segments, attn_mask).
    Returns (sequence_output [E, B_max, S, HID], pooled_output [E, B_max, HID]).
    """
    E = len(encoders)
    S = encoders[0][1].shape[1]
    B = max(ids.shape[0] for _, ids, _, _ in encoders)

    ints, wbs, vbs = [], [], []
    for packed, ids, segments, attn_mask in encoders:
        b = ids.shape[0]
        if b < B:   # pad smaller batch; padded rows are garbage-by-design, never read
            padn = B - b
            ids = jnp.pad(ids, ((0, padn), (0, 0)))
            segments = jnp.pad(segments, ((0, padn), (0, 0)))
            attn_mask = jnp.pad(attn_mask, ((0, padn), (0, 0)), constant_values=1)
        ints.append(jnp.stack([ids, segments, attn_mask]).astype(jnp.int32))
        wbs.append(packed["wblob"])
        vbs.append(packed["vblob"])

    int_all = jnp.stack(ints)        # (E, 3, B, S) int32
    w_all = jnp.stack(wbs)           # (E, 128, NCOL) bf16
    v_all = jnp.stack(vbs)           # (E, NVROWS, 128) f32

    kern = functools.partial(encoder_kernel, batch=B, seq_len=S)

    out = pl.pallas_call(
        kern,
        out_shape=jax.ShapeDtypeStruct((E, B * S, LANE), jnp.float32),
        grid_spec=pltpu.PrefetchScalarGridSpec(
            num_scalar_prefetch=0,
            grid=(E,),
            in_specs=[
                pl.BlockSpec((1, 3, B, S), lambda e: (e, 0, 0, 0)),      # ids/seg/mask
                pl.BlockSpec((1, LANE, NCOL), lambda e: (e, 0, 0)),      # weight blob (bf16)
                pl.BlockSpec((1, NVROWS, LANE), lambda e: (e, 0, 0)),    # vector blob (f32)
            ],
            out_specs=pl.BlockSpec((1, B * S, LANE), lambda e: (e, 0, 0)),
        ),
        compiler_params=pltpu.CompilerParams(
            dimension_semantics=("parallel",)),
    )(int_all, w_all, v_all)

    # free XLA slices in the wrapper (no in-kernel strided gather / extra output)
    seq = out[:, :, :HID].reshape(E, B, S, HID)
    pooled = out.reshape(E, B, S, LANE)[:, :, int(representation_token_pos), :HID]
    # TODO(synk): representation_token_pos as a per-sample tensor (DPR allows it)
    # is not supported; only a static scalar position is handled.
    return seq, pooled


def pack_encoder_params(p):
    """Pack all weights into ONE lane-aligned bf16 blob (128, NCOL) and ONE f32
    vector blob (NVROWS, 128), zero-padded so the kernel only ever touches
    128-lane-aligned slices (per-head Q/K/V/Wo get their own 128-lane block)."""
    w = jnp.zeros((LANE, NCOL), jnp.float32)
    w = w.at[:VOCAB, C_TOK:C_TOK + HID].set(p["tok_emb"])
    for h in range(NHEADS):
        hs = slice(h * HEAD, (h + 1) * HEAD)
        base = C_QKV + 3 * h * LANE
        w = w.at[:HID, base + 0 * LANE:base + 0 * LANE + HEAD].set(p["wq"][:, hs])
        w = w.at[:HID, base + 1 * LANE:base + 1 * LANE + HEAD].set(p["wk"][:, hs])
        w = w.at[:HID, base + 2 * LANE:base + 2 * LANE + HEAD].set(p["wv"][:, hs])
        w = w.at[:HEAD, C_WO + h * LANE:C_WO + h * LANE + HID].set(p["wo"][hs, :])
    w = w.at[:HID, C_W1:C_W1 + FFN].set(p["w1"])
    w = w.at[:FFN, C_W2:C_W2 + HID].set(p["w2"])

    v = jnp.zeros((NVROWS, LANE), jnp.float32)
    v = v.at[V_POS:V_POS + SEQ, :HID].set(p["pos_emb"])
    v = v.at[V_SEG0, :HID].set(p["seg_emb"][0])
    v = v.at[V_SEG1, :HID].set(p["seg_emb"][1])
    v = v.at[V_LNE_G, :HID].set(p["lne_g"][0])
    v = v.at[V_LNE_B, :HID].set(p["lne_b"][0])
    v = v.at[V_BO, :HID].set(p["bo"][0])
    v = v.at[V_LN1_G, :HID].set(p["ln1_g"][0])
    v = v.at[V_LN1_B, :HID].set(p["ln1_b"][0])
    v = v.at[V_B1, :FFN].set(p["b1"][0])
    v = v.at[V_B2, :HID].set(p["b2"][0])
    v = v.at[V_LN2_G, :HID].set(p["ln2_g"][0])
    v = v.at[V_LN2_B, :HID].set(p["ln2_b"][0])
    for h in range(NHEADS):
        hs = slice(h * HEAD, (h + 1) * HEAD)
        v = v.at[V_BQKV + 3 * h + 0, :HEAD].set(p["bq"][0, hs])
        v = v.at[V_BQKV + 3 * h + 1, :HEAD].set(p["bk"][0, hs])
        v = v.at[V_BQKV + 3 * h + 2, :HEAD].set(p["bv"][0, hs])

    return {"wblob": w.astype(jnp.bfloat16), "vblob": v}


def init_encoder_params(key):
    ks = jax.random.split(key, 9)
    sd = 0.02
    return {
        "tok_emb": sd * jax.random.normal(ks[0], (VOCAB, HID), jnp.float32),
        "seg_emb": sd * jax.random.normal(ks[1], (2, HID), jnp.float32),
        "pos_emb": sd * jax.random.normal(ks[2], (SEQ, HID), jnp.float32),
        "lne_g": jnp.ones((1, HID), jnp.float32),
        "lne_b": jnp.zeros((1, HID), jnp.float32),
        "wq": sd * jax.random.normal(ks[3], (HID, HID), jnp.float32),
        "bq": jnp.zeros((1, HID), jnp.float32),
        "wk": sd * jax.random.normal(ks[4], (HID, HID), jnp.float32),
        "bk": jnp.zeros((1, HID), jnp.float32),
        "wv": sd * jax.random.normal(ks[5], (HID, HID), jnp.float32),
        "bv": jnp.zeros((1, HID), jnp.float32),
        "wo": sd * jax.random.normal(ks[6], (HID, HID), jnp.float32),
        "bo": jnp.zeros((1, HID), jnp.float32),
        "ln1_g": jnp.ones((1, HID), jnp.float32),
        "ln1_b": jnp.zeros((1, HID), jnp.float32),
        "w1": sd * jax.random.normal(ks[7], (HID, FFN), jnp.float32),
        "b1": jnp.zeros((1, FFN), jnp.float32),
        "w2": sd * jax.random.normal(ks[8], (FFN, HID), jnp.float32),
        "b2": jnp.zeros((1, HID), jnp.float32),
        "ln2_g": jnp.ones((1, HID), jnp.float32),
        "ln2_b": jnp.zeros((1, HID), jnp.float32),
    }


class BiEncoder:
    """JAX/Pallas equivalent of dpr.models.biencoder.BiEncoder forward."""

    def __init__(self, question_params, ctx_params,
                 fix_q_encoder=False, fix_ctx_encoder=False):
        self.question_params = pack_encoder_params(question_params)
        self.ctx_params = pack_encoder_params(ctx_params)
        self.fix_q_encoder = fix_q_encoder
        self.fix_ctx_encoder = fix_ctx_encoder
        # TODO(synk): fix_*_encoder only affects autograd (torch.no_grad); mapped
        # to stop_gradient here -- no effect on the forward values.

    def forward(self, question_ids, question_segments, question_attn_mask,
                context_ids, ctx_segments, ctx_attn_mask,
                encoder_type=None, representation_token_pos=0):
        q_params = (self.question_params
                    if encoder_type is None or encoder_type == "question"
                    else self.ctx_params)
        c_params = (self.ctx_params
                    if encoder_type is None or encoder_type == "ctx"
                    else self.question_params)

        slots, encs = [], []
        if question_ids is not None:
            slots.append("q")
            encs.append((q_params, question_ids, question_segments, question_attn_mask))
        if context_ids is not None:
            slots.append("ctx")
            encs.append((c_params, context_ids, ctx_segments, ctx_attn_mask))
        if not encs:
            return None, None

        # Both encoders run in ONE fused pallas_call (grid over encoder index).
        _seq_all, pooled_all = run_encoders(
            encs, representation_token_pos=representation_token_pos)

        q_pooled, ctx_pooled = None, None
        for i, tag in enumerate(slots):
            b = encs[i][1].shape[0]
            pooled = pooled_all[i, :b]
            if tag == "q":
                q_pooled = jax.lax.stop_gradient(pooled) if self.fix_q_encoder else pooled
            else:
                ctx_pooled = jax.lax.stop_gradient(pooled) if self.fix_ctx_encoder else pooled
        # TODO(synk): hidden_states (HF output_hidden_states) is not modeled.
        return q_pooled, ctx_pooled

    __call__ = forward


if __name__ == "__main__":
    key = jax.random.PRNGKey(0)
    k_qenc, k_cenc, k_qid, k_cid = jax.random.split(key, 4)

    q_params = init_encoder_params(k_qenc)
    c_params = init_encoder_params(k_cenc)
    model = BiEncoder(q_params, c_params)

    B_Q, B_CTX = 2, 4   # 2 questions, 4 contexts (pos + negatives)
    question_ids = jax.random.randint(k_qid, (B_Q, SEQ), 0, VOCAB, jnp.int32)
    context_ids = jax.random.randint(k_cid, (B_CTX, SEQ), 0, VOCAB, jnp.int32)
    question_segments = jnp.zeros((B_Q, SEQ), jnp.int32)
    ctx_segments = jnp.zeros((B_CTX, SEQ), jnp.int32)
    question_attn_mask = jnp.ones((B_Q, SEQ), jnp.int32)
    ctx_attn_mask = jnp.ones((B_CTX, SEQ), jnp.int32)

    q_pooled, ctx_pooled = model(question_ids, question_segments, question_attn_mask,
                                 context_ids, ctx_segments, ctx_attn_mask)
    q_pooled = jax.block_until_ready(q_pooled)
    ctx_pooled = jax.block_until_ready(ctx_pooled)

    assert q_pooled.shape == (B_Q, HID) and ctx_pooled.shape == (B_CTX, HID)
    assert bool(jnp.all(jnp.isfinite(q_pooled))) and bool(jnp.all(jnp.isfinite(ctx_pooled)))
    print("KERNEL_OK")
</pallas_src>

<mosaic_0001>
module attributes {stable_mosaic.version = 11 : i64} {
  func.func @encoder_kernel(%arg0: i32, %arg1: memref<1x3x4x8xi32, #tpu.memory_space<vmem>>, %arg2: memref<1x128x1408xbf16, #tpu.memory_space<vmem>>, %arg3: memref<1x32x128xf32, #tpu.memory_space<vmem>>, %arg4: memref<1x32x128xf32, #tpu.memory_space<vmem>>) attributes {dimension_semantics = [#tpu.dimension_semantics<parallel>], iteration_bounds = array<i64: 2>, scalar_prefetch = 0 : i64, scratch_operands = 0 : i64, tpu.core_type = #tpu.core_type<tc>, window_params = [{transform_indices = @transform_0, window_bounds = array<i64: 1, 3, 4, 8>}, {transform_indices = @transform_1, window_bounds = array<i64: 1, 128, 1408>}, {transform_indices = @transform_2, window_bounds = array<i64: 1, 32, 128>}, {transform_indices = @transform_3, window_bounds = array<i64: 1, 32, 128>}]} {
    %c0 = arith.constant 0 : index
    %c0_0 = arith.constant 0 : index
    %c0_1 = arith.constant 0 : index
    %c0_2 = arith.constant 0 : index
    %0 = vector.load %arg1[%c0, %c0_0, %c0_1, %c0_2] : memref<1x3x4x8xi32, #tpu.memory_space<vmem>>, vector<1x3x4x8xi32>
    %1 = vector.shape_cast %0 : vector<1x3x4x8xi32> to vector<3x4x8xi32>
    %2 = vector.extract_strided_slice %1 {offsets = [0, 0, 0], sizes = [1, 4, 8], strides = [1, 1, 1]} : vector<3x4x8xi32> to vector<1x4x8xi32>
    %3 = vector.shape_cast %2 : vector<1x4x8xi32> to vector<4x8xi32>
    %4 = vector.extract_strided_slice %1 {offsets = [1, 0, 0], sizes = [1, 4, 8], strides = [1, 1, 1]} : vector<3x4x8xi32> to vector<1x4x8xi32>
    %5 = vector.shape_cast %4 : vector<1x4x8xi32> to vector<4x8xi32>
    %6 = vector.extract_strided_slice %1 {offsets = [2, 0, 0], sizes = [1, 4, 8], strides = [1, 1, 1]} : vector<3x4x8xi32> to vector<1x4x8xi32>
    %7 = vector.shape_cast %6 : vector<1x4x8xi32> to vector<4x8xi32>
    %c0_3 = arith.constant 0 : index
    %c0_4 = arith.constant 0 : index
    %c0_5 = arith.constant 0 : index
    %8 = vector.load %arg3[%c0_3, %c0_4, %c0_5] : memref<1x32x128xf32, #tpu.memory_space<vmem>>, vector<1x32x128xf32>
    %9 = vector.shape_cast %8 : vector<1x32x128xf32> to vector<32x128xf32>
    %10 = vector.extract_strided_slice %9 {offsets = [0, 0], sizes = [8, 128], strides = [1, 1]} : vector<32x128xf32> to vector<8x128xf32>
    %11 = vector.extract_strided_slice %9 {offsets = [8, 0], sizes = [1, 128], strides = [1, 1]} : vector<32x128xf32> to vector<1x128xf32>
    %12 = vector.extract_strided_slice %9 {offsets = [9, 0], sizes = [1, 128], strides = [1, 1]} : vector<32x128xf32> to vector<1x128xf32>
    %13 = vector.extract_strided_slice %9 {offsets = [10, 0], sizes = [1, 128], strides = [1, 1]} : vector<32x128xf32> to vector<1x128xf32>
    %14 = vector.extract_strided_slice %9 {offsets = [11, 0], sizes = [1, 128], strides = [1, 1]} : vector<32x128xf32> to vector<1x128xf32>
    %15 = vector.extract_strided_slice %9 {offsets = [12, 0], sizes = [1, 128], strides = [1, 1]} : vector<32x128xf32> to vector<1x128xf32>
    %16 = vector.extract_strided_slice %9 {offsets = [13, 0], sizes = [1, 128], strides = [1, 1]} : vector<32x128xf32> to vector<1x128xf32>
    %17 = vector.extract_strided_slice %9 {offsets = [14, 0], sizes = [1, 128], strides = [1, 1]} : vector<32x128xf32> to vector<1x128xf32>
    %18 = vector.extract_strided_slice %9 {offsets = [15, 0], sizes = [1, 128], strides = [1, 1]} : vector<32x128xf32> to vector<1x128xf32>
    %19 = vector.extract_strided_slice %9 {offsets = [16, 0], sizes = [1, 128], strides = [1, 1]} : vector<32x128xf32> to vector<1x128xf32>
    %20 = vector.extract_strided_slice %9 {offsets = [17, 0], sizes = [1, 128], strides = [1, 1]} : vector<32x128xf32> to vector<1x128xf32>
    %21 = vector.extract_strided_slice %9 {offsets = [18, 0], sizes = [1, 128], strides = [1, 1]} : vector<32x128xf32> to vector<1x128xf32>
    %22 = tpu.iota {dimensions = array<i32: 2>} : vector<4x8x128xi32>
    %23 = vector.shape_cast %3 : vector<4x8xi32> to vector<4x8x1xi32>
    %24 = vector.broadcast %23 : vector<4x8x1xi32> to vector<4x8x128xi32>
    %25 = arith.cmpi eq, %24, %22 : vector<4x8x128xi32>
    %cst = arith.constant 1.000000e+00 : f32
    %cst_6 = arith.constant 0.000000e+00 : f32
    %26 = vector.broadcast %cst : f32 to vector<4x8x128xf32>
    %27 = vector.broadcast %cst_6 : f32 to vector<4x8x128xf32>
    %28 = arith.select %25, %26, %27 : vector<4x8x128xi1>, vector<4x8x128xf32>
    %29 = vector.shape_cast %28 : vector<4x8x128xf32> to vector<32x128xf32>
    %30 = arith.truncf %29 : vector<32x128xf32> to vector<32x128xbf16>
    %c0_7 = arith.constant 0 : index
    %c0_8 = arith.constant 0 : index
    %c0_9 = arith.constant 0 : index
    %31 = vector.load %arg2[%c0_7, %c0_8, %c0_9] : memref<1x128x1408xbf16, #tpu.memory_space<vmem>>, vector<1x128x128xbf16>
    %32 = vector.shape_cast %31 : vector<1x128x128xbf16> to vector<128x128xbf16>
    %cst_10 = arith.constant dense<0.000000e+00> : vector<32x128xf32>
    %33 = tpu.matmul %30, %32, %cst_10 {dimension_numbers = #tpu.dot_dimension_numbers<[1], [0], [0], [1], [0, 0, 1, 1], [], []>} : vector<32x128xbf16>, vector<128x128xbf16>, vector<32x128xf32> -> vector<32x128xf32>
    %34 = arith.sitofp %5 : vector<4x8xi32> to vector<4x8xf32>
    %35 = vector.shape_cast %34 : vector<4x8xf32> to vector<4x8x1xf32>
    %36 = vector.shape_cast %11 : vector<1x128xf32> to vector<1x1x128xf32>
    %37 = arith.subf %12, %11 : vector<1x128xf32>
    %38 = vector.shape_cast %37 : vector<1x128xf32> to vector<1x1x128xf32>
    %39 = vector.broadcast %38 : vector<1x1x128xf32> to vector<4x8x128xf32>
    %40 = vector.broadcast %35 : vector<4x8x1xf32> to vector<4x8x128xf32>
    %41 = arith.mulf %39, %40 : vector<4x8x128xf32>
    %42 = vector.broadcast %36 : vector<1x1x128xf32> to vector<4x8x128xf32>
    %43 = arith.addf %42, %41 : vector<4x8x128xf32>
    %44 = vector.shape_cast %43 : vector<4x8x128xf32> to vector<32x128xf32>
    %45 = vector.shape_cast %10 : vector<8x128xf32> to vector<1x8x128xf32>
    %46 = vector.shape_cast %45 : vector<1x8x128xf32> to vector<1x8x128xf32>
    %47 = vector.broadcast %46 : vector<1x8x128xf32> to vector<4x8x128xf32>
    %48 = vector.shape_cast %47 : vector<4x8x128xf32> to vector<32x128xf32>
    %49 = arith.addf %33, %44 : vector<32x128xf32>
    %50 = arith.addf %49, %48 : vector<32x128xf32>
    %cst_11 = arith.constant dense<0.000000e+00> : vector<32xf32>
    %51 = vector.multi_reduction <add>, %50, %cst_11 [1] : vector<32x128xf32> to vector<32xf32>
    %52 = vector.shape_cast %51 : vector<32xf32> to vector<32x1xf32>
    %53 = arith.mulf %50, %50 : vector<32x128xf32>
    %cst_12 = arith.constant dense<0.000000e+00> : vector<32xf32>
    %54 = vector.multi_reduction <add>, %53, %cst_12 [1] : vector<32x128xf32> to vector<32xf32>
    %55 = vector.shape_cast %54 : vector<32xf32> to vector<32x1xf32>
    %cst_13 = arith.constant 3.125000e-02 : f32
    %56 = vector.broadcast %cst_13 : f32 to vector<32x1xf32>
    %57 = arith.mulf %52, %56 : vector<32x1xf32>
    %cst_14 = arith.constant 3.125000e-02 : f32
    %58 = vector.broadcast %cst_14 : f32 to vector<32x1xf32>
    %59 = arith.mulf %55, %58 : vector<32x1xf32>
    %60 = arith.mulf %57, %57 : vector<32x1xf32>
    %61 = arith.subf %59, %60 : vector<32x1xf32>
    %cst_15 = arith.constant 0.000000e+00 : f32
    %62 = vector.broadcast %cst_15 : f32 to vector<32x1xf32>
    %63 = arith.maximumf %61, %62 : vector<32x1xf32>
    %64 = vector.broadcast %57 : vector<32x1xf32> to vector<32x128xf32>
    %65 = arith.subf %50, %64 : vector<32x128xf32>
    %cst_16 = arith.constant 9.99999996E-13 : f32
    %66 = vector.broadcast %cst_16 : f32 to vector<32x1xf32>
    %67 = arith.addf %63, %66 : vector<32x1xf32>
    %68 = math.rsqrt %67 : vector<32x1xf32>
    %69 = vector.broadcast %68 : vector<32x1xf32> to vector<32x128xf32>
    %70 = arith.mulf %65, %69 : vector<32x128xf32>
    %71 = vector.broadcast %13 : vector<1x128xf32> to vector<32x128xf32>
    %72 = arith.mulf %70, %71 : vector<32x128xf32>
    %73 = vector.broadcast %14 : vector<1x128xf32> to vector<32x128xf32>
    %74 = arith.addf %72, %73 : vector<32x128xf32>
    %75 = arith.sitofp %7 : vector<4x8xi32> to vector<4x8xf32>
    %cst_17 = arith.constant 1.000000e+00 : f32
    %76 = vector.broadcast %cst_17 : f32 to vector<4x8xf32>
    %77 = arith.subf %76, %75 : vector<4x8xf32>
    %cst_18 = arith.constant -1.000000e+09 : f32
    %78 = vector.broadcast %cst_18 : f32 to vector<4x8xf32>
    %79 = arith.mulf %77, %78 : vector<4x8xf32>
    %80 = arith.truncf %74 : vector<32x128xf32> to vector<32x128xbf16>
    %c0_19 = arith.constant 0 : index
    %c0_20 = arith.constant 0 : index
    %c128 = arith.constant 128 : index
    %81 = vector.load %arg2[%c0_19, %c0_20, %c128] : memref<1x128x1408xbf16, #tpu.memory_space<vmem>>, vector<1x128x768xbf16>
    %82 = vector.shape_cast %81 : vector<1x128x768xbf16> to vector<128x768xbf16>
    %cst_21 = arith.constant dense<0.000000e+00> : vector<32x768xf32>
    %83 = tpu.matmul %80, %82, %cst_21 {dimension_numbers = #tpu.dot_dimension_numbers<[1], [0], [0], [1], [0, 0, 1, 1], [], []>} : vector<32x128xbf16>, vector<128x768xbf16>, vector<32x768xf32> -> vector<32x768xf32>
    %84 = vector.extract_strided_slice %9 {offsets = [19, 0], sizes = [1, 128], strides = [1, 1]} : vector<32x128xf32> to vector<1x128xf32>
    %85 = vector.extract_strided_slice %9 {offsets = [20, 0], sizes = [1, 128], strides = [1, 1]} : vector<32x128xf32> to vector<1x128xf32>
    %86 = vector.extract_strided_slice %9 {offsets = [21, 0], sizes = [1, 128], strides = [1, 1]} : vector<32x128xf32> to vector<1x128xf32>
    %87 = vector.extract_strided_slice %83 {offsets = [0, 0], sizes = [32, 128], strides = [1, 1]} : vector<32x768xf32> to vector<32x128xf32>
    %88 = vector.broadcast %84 : vector<1x128xf32> to vector<32x128xf32>
    %89 = arith.addf %87, %88 : vector<32x128xf32>
    %90 = vector.shape_cast %89 : vector<32x128xf32> to vector<4x8x128xf32>
    %91 = arith.truncf %90 : vector<4x8x128xf32> to vector<4x8x128xbf16>
    %92 = vector.extract_strided_slice %83 {offsets = [0, 128], sizes = [32, 128], strides = [1, 1]} : vector<32x768xf32> to vector<32x128xf32>
    %93 = vector.broadcast %85 : vector<1x128xf32> to vector<32x128xf32>
    %94 = arith.addf %92, %93 : vector<32x128xf32>
    %95 = vector.shape_cast %94 : vector<32x128xf32> to vector<4x8x128xf32>
    %96 = arith.truncf %95 : vector<4x8x128xf32> to vector<4x8x128xbf16>
    %97 = vector.extract_strided_slice %83 {offsets = [0, 256], sizes = [32, 128], strides = [1, 1]} : vector<32x768xf32> to vector<32x128xf32>
    %98 = vector.broadcast %86 : vector<1x128xf32> to vector<32x128xf32>
    %99 = arith.addf %97, %98 : vector<32x128xf32>
    %100 = vector.shape_cast %99 : vector<32x128xf32> to vector<4x8x128xf32>
    %101 = arith.truncf %100 : vector<4x8x128xf32> to vector<4x8x128xbf16>
    "tpu.trace_start"() <{level = 10 : i32, message = "bid,bjd->bij"}> : () -> ()
    %cst_22 = arith.constant dense<0.000000e+00> : vector<4x8x8xf32>
    %102 = tpu.matmul %91, %96, %cst_22 {dimension_numbers = #tpu.dot_dimension_numbers<[2], [2], [1], [1], [0, 0, 0, 1, 1, 1], [0], [0]>} : vector<4x8x128xbf16>, vector<4x8x128xbf16>, vector<4x8x8xf32> -> vector<4x8x8xf32>
    "tpu.trace_stop"() : () -> ()
    %cst_23 = arith.constant 2.500000e-01 : f32
    %103 = vector.broadcast %cst_23 : f32 to vector<4x8x8xf32>
    %104 = arith.mulf %102, %103 : vector<4x8x8xf32>
    %105 = vector.shape_cast %79 : vector<4x8xf32> to vector<4x1x8xf32>
    %106 = vector.broadcast %105 : vector<4x1x8xf32> to vector<4x8x8xf32>
    %107 = arith.addf %104, %106 : vector<4x8x8xf32>
    %cst_24 = arith.constant dense<0xFF800000> : vector<4x8xf32>
    %108 = vector.multi_reduction <maximumf>, %107, %cst_24 [2] : vector<4x8x8xf32> to vector<4x8xf32>
    %109 = vector.shape_cast %108 : vector<4x8xf32> to vector<4x8x1xf32>
    %110 = vector.broadcast %109 : vector<4x8x1xf32> to vector<4x8x8xf32>
    %111 = arith.subf %107, %110 : vector<4x8x8xf32>
    %112 = math.exp %111 : vector<4x8x8xf32>
    %cst_25 = arith.constant dense<0.000000e+00> : vector<4x8xf32>
    %113 = vector.multi_reduction <add>, %112, %cst_25 [2] : vector<4x8x8xf32> to vector<4x8xf32>
    %114 = vector.shape_cast %113 : vector<4x8xf32> to vector<4x8x1xf32>
    %115 = tpu.reciprocal %114 {approx = true} : vector<4x8x1xf32> -> vector<4x8x1xf32>
    %116 = vector.broadcast %115 : vector<4x8x1xf32> to vector<4x8x8xf32>
    %117 = arith.mulf %112, %116 : vector<4x8x8xf32>
    %118 = arith.truncf %117 : vector<4x8x8xf32> to vector<4x8x8xbf16>
    "tpu.trace_start"() <{level = 10 : i32, message = "bij,bjd->bid"}> : () -> ()
    %cst_26 = arith.constant dense<0.000000e+00> : vector<4x8x128xf32>
    %119 = tpu.matmul %118, %101, %cst_26 {dimension_numbers = #tpu.dot_dimension_numbers<[2], [1], [1], [2], [0, 0, 0, 1, 1, 2], [0], [0]>} : vector<4x8x8xbf16>, vector<4x8x128xbf16>, vector<4x8x128xf32> -> vector<4x8x128xf32>
    "tpu.trace_stop"() : () -> ()
    %120 = vector.shape_cast %119 : vector<4x8x128xf32> to vector<32x128xf32>
    %121 = arith.truncf %120 : vector<32x128xf32> to vector<32x128xbf16>
    %c0_27 = arith.constant 0 : index
    %c0_28 = arith.constant 0 : index
    %c896 = arith.constant 896 : index
    %122 = vector.load %arg2[%c0_27, %c0_28, %c896] : memref<1x128x1408xbf16, #tpu.memory_space<vmem>>, vector<1x128x128xbf16>
    %123 = vector.shape_cast %122 : vector<1x128x128xbf16> to vector<128x128xbf16>
    %cst_29 = arith.constant dense<0.000000e+00> : vector<32x128xf32>
    %124 = tpu.matmul %121, %123, %cst_29 {dimension_numbers = #tpu.dot_dimension_numbers<[1], [0], [0], [1], [0, 0, 1, 1], [], []>} : vector<32x128xbf16>, vector<128x128xbf16>, vector<32x128xf32> -> vector<32x128xf32>
    %125 = vector.extract_strided_slice %9 {offsets = [22, 0], sizes = [1, 128], strides = [1, 1]} : vector<32x128xf32> to vector<1x128xf32>
    %126 = vector.extract_strided_slice %9 {offsets = [23, 0], sizes = [1, 128], strides = [1, 1]} : vector<32x128xf32> to vector<1x128xf32>
    %127 = vector.extract_strided_slice %9 {offsets = [24, 0], sizes = [1, 128], strides = [1, 1]} : vector<32x128xf32> to vector<1x128xf32>
    %128 = vector.extract_strided_slice %83 {offsets = [0, 384], sizes = [32, 128], strides = [1, 1]} : vector<32x768xf32> to vector<32x128xf32>
    %129 = vector.broadcast %125 : vector<1x128xf32> to vector<32x128xf32>
    %130 = arith.addf %128, %129 : vector<32x128xf32>
    %131 = vector.shape_cast %130 : vector<32x128xf32> to vector<4x8x128xf32>
    %132 = arith.truncf %131 : vector<4x8x128xf32> to vector<4x8x128xbf16>
    %133 = vector.extract_strided_slice %83 {offsets = [0, 512], sizes = [32, 128], strides = [1, 1]} : vector<32x768xf32> to vector<32x128xf32>
    %134 = vector.broadcast %126 : vector<1x128xf32> to vector<32x128xf32>
    %135 = arith.addf %133, %134 : vector<32x128xf32>
    %136 = vector.shape_cast %135 : vector<32x128xf32> to vector<4x8x128xf32>
    %137 = arith.truncf %136 : vector<4x8x128xf32> to vector<4x8x128xbf16>
    %138 = vector.extract_strided_slice %83 {offsets = [0, 640], sizes = [32, 128], strides = [1, 1]} : vector<32x768xf32> to vector<32x128xf32>
    %139 = vector.broadcast %127 : vector<1x128xf32> to vector<32x128xf32>
    %140 = arith.addf %138, %139 : vector<32x128xf32>
    %141 = vector.shape_cast %140 : vector<32x128xf32> to vector<4x8x128xf32>
    %142 = arith.truncf %141 : vector<4x8x128xf32> to vector<4x8x128xbf16>
    "tpu.trace_start"() <{level = 10 : i32, message = "bid,bjd->bij"}> : () -> ()
    %cst_30 = arith.constant dense<0.000000e+00> : vector<4x8x8xf32>
    %143 = tpu.matmul %132, %137, %cst_30 {dimension_numbers = #tpu.dot_dimension_numbers<[2], [2], [1], [1], [0, 0, 0, 1, 1, 1], [0], [0]>} : vector<4x8x128xbf16>, vector<4x8x128xbf16>, vector<4x8x8xf32> -> vector<4x8x8xf32>
    "tpu.trace_stop"() : () -> ()
    %cst_31 = arith.constant 2.500000e-01 : f32
    %144 = vector.broadcast %cst_31 : f32 to vector<4x8x8xf32>
    %145 = arith.mulf %143, %144 : vector<4x8x8xf32>
    %146 = vector.shape_cast %79 : vector<4x8xf32> to vector<4x1x8xf32>
    %147 = vector.broadcast %146 : vector<4x1x8xf32> to vector<4x8x8xf32>
    %148 = arith.addf %145, %147 : vector<4x8x8xf32>
    %cst_32 = arith.constant dense<0xFF800000> : vector<4x8xf32>
    %149 = vector.multi_reduction <maximumf>, %148, %cst_32 [2] : vector<4x8x8xf32> to vector<4x8xf32>
    %150 = vector.shape_cast %149 : vector<4x8xf32> to vector<4x8x1xf32>
    %151 = vector.broadcast %150 : vector<4x8x1xf32> to vector<4x8x8xf32>
    %152 = arith.subf %148, %151 : vector<4x8x8xf32>
    %153 = math.exp %152 : vector<4x8x8xf32>
    %cst_33 = arith.constant dense<0.000000e+00> : vector<4x8xf32>
    %154 = vector.multi_reduction <add>, %153, %cst_33 [2] : vector<4x8x8xf32> to vector<4x8xf32>
    %155 = vector.shape_cast %154 : vector<4x8xf32> to vector<4x8x1xf32>
    %156 = tpu.reciprocal %155 {approx = true} : vector<4x8x1xf32> -> vector<4x8x1xf32>
    %157 = vector.broadcast %156 : vector<4x8x1xf32> to vector<4x8x8xf32>
    %158 = arith.mulf %153, %157 : vector<4x8x8xf32>
    %159 = arith.truncf %158 : vector<4x8x8xf32> to vector<4x8x8xbf16>
    "tpu.trace_start"() <{level = 10 : i32, message = "bij,bjd->bid"}> : () -> ()
    %cst_34 = arith.constant dense<0.000000e+00> : vector<4x8x128xf32>
    %160 = tpu.matmul %159, %142, %cst_34 {dimension_numbers = #tpu.dot_dimension_numbers<[2], [1], [1], [2], [0, 0, 0, 1, 1, 2], [0], [0]>} : vector<4x8x8xbf16>, vector<4x8x128xbf16>, vector<4x8x128xf32> -> vector<4x8x128xf32>
    "tpu.trace_stop"() : () -> ()
    %161 = vector.shape_cast %160 : vector<4x8x128xf32> to vector<32x128xf32>
    %162 = arith.truncf %161 : vector<32x128xf32> to vector<32x128xbf16>
    %c0_35 = arith.constant 0 : index
    %c0_36 = arith.constant 0 : index
    %c1024 = arith.constant 1024 : index
    %163 = vector.load %arg2[%c0_35, %c0_36, %c1024] : memref<1x128x1408xbf16, #tpu.memory_space<vmem>>, vector<1x128x128xbf16>
    %164 = vector.shape_cast %163 : vector<1x128x128xbf16> to vector<128x128xbf16>
    %cst_37 = arith.constant dense<0.000000e+00> : vector<32x128xf32>
    %165 = tpu.matmul %162, %164, %cst_37 {dimension_numbers = #tpu.dot_dimension_numbers<[1], [0], [0], [1], [0, 0, 1, 1], [], []>} : vector<32x128xbf16>, vector<128x128xbf16>, vector<32x128xf32> -> vector<32x128xf32>
    %166 = arith.addf %124, %165 : vector<32x128xf32>
    %167 = vector.broadcast %15 : vector<1x128xf32> to vector<32x128xf32>
    %168 = arith.addf %166, %167 : vector<32x128xf32>
    %169 = arith.addf %74, %168 : vector<32x128xf32>
    %cst_38 = arith.constant dense<0.000000e+00> : vector<32xf32>
    %170 = vector.multi_reduction <add>, %169, %cst_38 [1] : vector<32x128xf32> to vector<32xf32>
    %171 = vector.shape_cast %170 : vector<32xf32> to vector<32x1xf32>
    %172 = arith.mulf %169, %169 : vector<32x128xf32>
    %cst_39 = arith.constant dense<0.000000e+00> : vector<32xf32>
    %173 = vector.multi_reduction <add>, %172, %cst_39 [1] : vector<32x128xf32> to vector<32xf32>
    %174 = vector.shape_cast %173 : vector<32xf32> to vector<32x1xf32>
    %cst_40 = arith.constant 3.125000e-02 : f32
    %175 = vector.broadcast %cst_40 : f32 to vector<32x1xf32>
    %176 = arith.mulf %171, %175 : vector<32x1xf32>
    %cst_41 = arith.constant 3.125000e-02 : f32
    %177 = vector.broadcast %cst_41 : f32 to vector<32x1xf32>
    %178 = arith.mulf %174, %177 : vector<32x1xf32>
    %179 = arith.mulf %176, %176 : vector<32x1xf32>
    %180 = arith.subf %178, %179 : vector<32x1xf32>
    %cst_42 = arith.constant 0.000000e+00 : f32
    %181 = vector.broadcast %cst_42 : f32 to vector<32x1xf32>
    %182 = arith.maximumf %180, %181 : vector<32x1xf32>
    %183 = vector.broadcast %176 : vector<32x1xf32> to vector<32x128xf32>
    %184 = arith.subf %169, %183 : vector<32x128xf32>
    %cst_43 = arith.constant 9.99999996E-13 : f32
    %185 = vector.broadcast %cst_43 : f32 to vector<32x1xf32>
    %186 = arith.addf %182, %185 : vector<32x1xf32>
    %187 = math.rsqrt %186 : vector<32x1xf32>
    %188 = vector.broadcast %187 : vector<32x1xf32> to vector<32x128xf32>
    %189 = arith.mulf %184, %188 : vector<32x128xf32>
    %190 = vector.broadcast %16 : vector<1x128xf32> to vector<32x128xf32>
    %191 = arith.mulf %189, %190 : vector<32x128xf32>
    %192 = vector.broadcast %17 : vector<1x128xf32> to vector<32x128xf32>
    %193 = arith.addf %191, %192 : vector<32x128xf32>
    %194 = arith.truncf %193 : vector<32x128xf32> to vector<32x128xbf16>
    %c0_44 = arith.constant 0 : index
    %c0_45 = arith.constant 0 : index
    %c1152 = arith.constant 1152 : index
    %195 = vector.load %arg2[%c0_44, %c0_45, %c1152] : memref<1x128x1408xbf16, #tpu.memory_space<vmem>>, vector<1x128x128xbf16>
    %196 = vector.shape_cast %195 : vector<1x128x128xbf16> to vector<128x128xbf16>
    %cst_46 = arith.constant dense<0.000000e+00> : vector<32x128xf32>
    %197 = tpu.matmul %194, %196, %cst_46 {dimension_numbers = #tpu.dot_dimension_numbers<[1], [0], [0], [1], [0, 0, 1, 1], [], []>} : vector<32x128xbf16>, vector<128x128xbf16>, vector<32x128xf32> -> vector<32x128xf32>
    %198 = vector.broadcast %18 : vector<1x128xf32> to vector<32x128xf32>
    %199 = arith.addf %197, %198 : vector<32x128xf32>
    %200 = arith.mulf %199, %199 : vector<32x128xf32>
    %201 = arith.mulf %199, %200 : vector<32x128xf32>
    %cst_47 = arith.constant 4.471500e-02 : f32
    %202 = vector.broadcast %cst_47 : f32 to vector<32x128xf32>
    %203 = arith.mulf %202, %201 : vector<32x128xf32>
    %204 = arith.addf %199, %203 : vector<32x128xf32>
    %cst_48 = arith.constant 0.797884583 : f32
    %205 = vector.broadcast %cst_48 : f32 to vector<32x128xf32>
    %206 = arith.mulf %205, %204 : vector<32x128xf32>
    %207 = math.tanh %206 : vector<32x128xf32>
    %cst_49 = arith.constant 1.000000e+00 : f32
    %208 = vector.broadcast %cst_49 : f32 to vector<32x128xf32>
    %209 = arith.addf %208, %207 : vector<32x128xf32>
    %cst_50 = arith.constant 5.000000e-01 : f32
    %210 = vector.broadcast %cst_50 : f32 to vector<32x128xf32>
    %211 = arith.mulf %210, %209 : vector<32x128xf32>
    %212 = arith.mulf %199, %211 : vector<32x128xf32>
    %213 = arith.truncf %212 : vector<32x128xf32> to vector<32x128xbf16>
    %c0_51 = arith.constant 0 : index
    %c0_52 = arith.constant 0 : index
    %c1280 = arith.constant 1280 : index
    %214 = vector.load %arg2[%c0_51, %c0_52, %c1280] : memref<1x128x1408xbf16, #tpu.memory_space<vmem>>, vector<1x128x128xbf16>
    %215 = vector.shape_cast %214 : vector<1x128x128xbf16> to vector<128x128xbf16>
    %cst_53 = arith.constant dense<0.000000e+00> : vector<32x128xf32>
    %216 = tpu.matmul %213, %215, %cst_53 {dimension_numbers = #tpu.dot_dimension_numbers<[1], [0], [0], [1], [0, 0, 1, 1], [], []>} : vector<32x128xbf16>, vector<128x128xbf16>, vector<32x128xf32> -> vector<32x128xf32>
    %217 = vector.broadcast %19 : vector<1x128xf32> to vector<32x128xf32>
    %218 = arith.addf %216, %217 : vector<32x128xf32>
    %219 = arith.addf %193, %218 : vector<32x128xf32>
    %cst_54 = arith.constant dense<0.000000e+00> : vector<32xf32>
    %220 = vector.multi_reduction <add>, %219, %cst_54 [1] : vector<32x128xf32> to vector<32xf32>
    %221 = vector.shape_cast %220 : vector<32xf32> to vector<32x1xf32>
    %222 = arith.mulf %219, %219 : vector<32x128xf32>
    %cst_55 = arith.constant dense<0.000000e+00> : vector<32xf32>
    %223 = vector.multi_reduction <add>, %222, %cst_55 [1] : vector<32x128xf32> to vector<32xf32>
    %224 = vector.shape_cast %223 : vector<32xf32> to vector<32x1xf32>
    %cst_56 = arith.constant 3.125000e-02 : f32
    %225 = vector.broadcast %cst_56 : f32 to vector<32x1xf32>
    %226 = arith.mulf %221, %225 : vector<32x1xf32>
    %cst_57 = arith.constant 3.125000e-02 : f32
    %227 = vector.broadcast %cst_57 : f32 to vector<32x1xf32>
    %228 = arith.mulf %224, %227 : vector<32x1xf32>
    %229 = arith.mulf %226, %226 : vector<32x1xf32>
    %230 = arith.subf %228, %229 : vector<32x1xf32>
    %cst_58 = arith.constant 0.000000e+00 : f32
    %231 = vector.broadcast %cst_58 : f32 to vector<32x1xf32>
    %232 = arith.maximumf %230, %231 : vector<32x1xf32>
    %233 = vector.broadcast %226 : vector<32x1xf32> to vector<32x128xf32>
    %234 = arith.subf %219, %233 : vector<32x128xf32>
    %cst_59 = arith.constant 9.99999996E-13 : f32
    %235 = vector.broadcast %cst_59 : f32 to vector<32x1xf32>
    %236 = arith.addf %232, %235 : vector<32x1xf32>
    %237 = math.rsqrt %236 : vector<32x1xf32>
    %238 = vector.broadcast %237 : vector<32x1xf32> to vector<32x128xf32>
    %239 = arith.mulf %234, %238 : vector<32x128xf32>
    %240 = vector.broadcast %20 : vector<1x128xf32> to vector<32x128xf32>
    %241 = arith.mulf %239, %240 : vector<32x128xf32>
    %242 = vector.broadcast %21 : vector<1x128xf32> to vector<32x128xf32>
    %243 = arith.addf %241, %242 : vector<32x128xf32>
    %c0_60 = arith.constant 0 : index
    %c0_61 = arith.constant 0 : index
    %c0_62 = arith.constant 0 : index
    %244 = vector.load %arg4[%c0_60, %c0_61, %c0_62] : memref<1x32x128xf32, #tpu.memory_space<vmem>>, vector<1x32x128xf32>
    %245 = vector.shape_cast %244 : vector<1x32x128xf32> to vector<32x128xf32>
    %246 = vector.shape_cast %243 : vector<32x128xf32> to vector<1x32x128xf32>
    tpu.vector_store %arg4[%c0_60, %c0_61, %c0_62], %246 {strides = array<i32>} : memref<1x32x128xf32, #tpu.memory_space<vmem>>, vector<1x32x128xf32>,
    return
  }
  func.func @transform_0(%arg0: i32) -> (i32, i32, i32, i32) {
    %c0_i32 = arith.constant 0 : i32
    %c0_i32_0 = arith.constant 0 : i32
    %c0_i32_1 = arith.constant 0 : i32
    %c0_i32_2 = arith.constant 0 : i32
    return %arg0, %c0_i32, %c0_i32_0, %c0_i32_1 : i32, i32, i32, i32
  }
  func.func @transform_1(%arg0: i32) -> (i32, i32, i32) {
    %c0_i32 = arith.constant 0 : i32
    %c0_i32_0 = arith.constant 0 : i32
    %c0_i32_1 = arith.constant 0 : i32
    return %arg0, %c0_i32, %c0_i32_0 : i32, i32, i32
  }
  func.func @transform_2(%arg0: i32) -> (i32, i32, i32) {
    %c0_i32 = arith.constant 0 : i32
    %c0_i32_0 = arith.constant 0 : i32
    %c0_i32_1 = arith.constant 0 : i32
    return %arg0, %c0_i32, %c0_i32_0 : i32, i32, i32
  }
  func.func @transform_3(%arg0: i32) -> (i32, i32, i32) {
    %c0_i32 = arith.constant 0 : i32
    %c0_i32_0 = arith.constant 0 : i32
    %c0_i32_1 = arith.constant 0 : i32
    return %arg0, %c0_i32, %c0_i32_0 : i32, i32, i32
  }
}

</mosaic_0001>

<bundles_post_ra>
// kernel: tpu_custom_call.1
= control target key start
LH: loop header
LB: loop body
LE: loop exit
PB: predicated region body
PF: predicated region fallthrough
CT: control target
= control target key end

     0   :  { %s3580_s0 = inlined_call_operand.hbm [shape: s32[2,3,4,8], index: 0, kind: input, shape index: {}]   ;;  %s3581_s1 = inlined_call_operand.hbm [shape: bf16[2,128,1408], index: 1, kind: input, shape index: {}]   ;;  %s3582_s2 = inlined_call_operand.hbm [shape: f32[2,32,128], index: 2, kind: input, shape index: {}]   ;;  %s3583_s3 = inlined_call_operand.hbm [shape: f32[2,32,128], index: 3, kind: output, shape index: {}]  }
   0x1   :  { %3585 = sst [smem:[#allocation14_spill]] %s3581_s1 }
   0x2   :  { %8 = vsyncpa [#allocation3], 0 }
   0x3   :  { %10 = vsyncpa [#allocation3 + $0x1], 0 }
   0x4   :  { %11 = vsyncpa [#allocation6], 0 }
   0x5   :  { %13 = vsyncpa [#allocation6 + $0x1], 0 }
   0x6   :  { %14 = vsyncpa [#allocation4], 0 }
   0x7   :  { %16 = vsyncpa [#allocation4 + $0x1], 0  ;;  %s2927_s12 = smov 0   ;;  %s2929_s13 = smov 0  }
   0x8   :  { %s2931_s14 = smov 0   ;;  %s2933_s15 = smov 0  }
   0x9 LB: > { %3586 = sst [smem:[#allocation12_spill]] %s2892_s14  ;;  %s2948_s16 = sadd.s32 4294967295, %s2896_s15   ;;  %s2896_s15 = sphi %s2933_s15, %s3600_s15   ;;  %s2892_s14 = sphi %s2931_s14, %s3597_s14   ;;  %s2888_s13 = sphi %s2929_s13, %s3599_s13   ;;  %s2884_s12 = sphi %s2927_s12, %s3598_s12  }
   0xa   : > { %s2126_s17 = sadd.s32 4294967294, %s2896_s15   ;;  %s2952_s18 = sadd.s32 1, %s2896_s15  }
   0xb   : > { %s29_s19 = sadd.s32 1, %s2892_s14  ;;  %s26_s20 = ssub.s32 %s2896_s15, %s2952_s18 }
   0xc   : > { %p36_p0 = scmp.ne.s32.totalorder %s2892_s14, %s2888_s13  ;;  %p27_p1 = scmp.eq.s32.totalorder %s26_s20, 0 }
   0xd   : > { %p37_p2 = scmp.eq.s32.totalorder %s2896_s15, 0  ;;  %p42_p3 = scmp.ne.s32.totalorder %s2888_s13, %s2884_s12 }
   0xe   : > { %p43_p4 = scmp.eq.s32.totalorder %s2948_s16, 0  ;;  %p118_p7 = scmp.eq.s32.totalorder %s2948_s16, 1 }
   0xf   : > { %s2964_s21 = scalar_select %p27_p1, %s2892_s14, %s29_s19  }
  0x10   : > { %p38_p5 = por %p37_p2, %p36_p0  ;;  %p2966_p6 = por %p43_p4, %p42_p3 }
  0x11   : > { %3587 = sst [smem:[#allocation13_spill]] %s2964_s21  ;;  %p124_p8 = scmp.eq.s32.totalorder %s2126_s17, 1 }
  0x12   : > { %p2128_p9 = scmp.ge.s32.totalorder %s2896_s15, 2  ;;  %p2624_p10 = scmp.lt.s32.totalorder %s2896_s15, 2 }
  0x13   : > { %p2973_p11 = por %p118_p7, %p36_p0  ;;  %p2977_p12 = por %p124_p8, %p42_p3 }
  0x14   : > { %s2982_s25 = sand.u32 1, %s2892_s14   ;;  %p2984_p13 = pnand %p2624_p10, %p38_p5 }
  0x15   : > { %s166_s27 = sand.u32 1, %s2896_s15   ;;  %s2598_s28 = smul.u32 704, %s2982_s25 }
  0x16   : > { %s2599_s29 = smul.u32 704, %s2896_s15  ;;  %s3592_s1 = sld [smem:[#allocation14_spill]] }
  0x17   : > { %s170_s30 = scalar_lea.vmem [#allocation5], %s2598_s28  ;;  %p2134_p0 = scmp.ge.s32.totalorder %s2896_s15, 1 }
  0x18   : > { %s178_s4 = sshll.u32 %s170_s30, 4  ;;  %s2995_s9 = scalar_lea.sflag [#allocation6], %s166_s27  ;;  %s179_s4 = int_to_ptr.vmem [resolvable:$true] %s178_s4 }
  0x19   : > { %p2740_p2 = pneg %p2984_p13 }
  0x1c   : > { %s175_s7 = scalar_lea.hbm %s3592_s1, %s2599_s29  ;;  %s2743_s20 = scalar_lea.hbm %s3592_s1, 1408 }
  0x1d   : > { %s176_s8 = sshll.u32 %s175_s7, 4  ;;  %s177_s8 = int_to_ptr.hbm [resolvable:$true] %s176_s8 }
  0x1e   : > { %s2736_s10 = sshra.s32 %s177_s8, 4  ;;  %s2737_s10 = int_to_ptr.hbm [resolvable:$true] %s2736_s10 }
  0x1f   : > { %s2738_s11 = scalar_lea.hbm %s2737_s10, 704  ;;  %p2744_p5 = scmp.lt.s32.totalorder %s2737_s10, %s3592_s1 }
  0x20   : > { %p2739_p1 = scmp.ne.s32.totalorder %s2737_s10, %s2738_s11  ;;  %p2745_p7 = scmp.lt.s32.totalorder %s2743_s20, %s2738_s11 }
  0x22   : > { %p2741_p3 = pnand %p2740_p2, %p2739_p1  ;;  %p2746_p8 = por %p2745_p7, %p2744_p5 }
  0x24   : > { %p2742_p4 = pneg %p2741_p3 }
  0x26   : > { %p2747_p10 = pnand %p2746_p8, %p2742_p4 }
  0x28   : > { %2750 = shalt.err (!%p2747_p10)
}
  0x29   : > { %s2898_s27 = smov 704   ;;  %s2899_s30 = smov 44  }
  0x2a   : > { %2616 = dma.hbm_to_vmem [thread:$0]  (!%p2984_p13), %s177_s8, 11264, %s179_s4, %s2995_s9, %s2898_s27, %s2898_s27, %s2899_s30  }
  0x2b   : > { %p208_p1 = scmp.lt.s32.totalorder %s2896_s15, 3  ;;  %s2596_s5 = smul.u32 12, %s2982_s25 }
  0x2c   : > { %s2597_s7 = smul.u32 12, %s2896_s15  ;;  %s2131_s29 = sshll.u32 %s2982_s25, 5 }
  0x2d   : > { %p3015_p3 = pnand %p2134_p0, %p208_p1  ;;  %s148_s19 = scalar_lea.vmem [#allocation2], %s2596_s5 }
  0x2e   : > { %s153_s17 = scalar_lea.hbm %s3580_s0, %s2597_s7  ;;  %s156_s20 = sshll.u32 %s148_s19, 4  ;;  %s157_s20 = int_to_ptr.vmem [resolvable:$true] %s156_s20 }
  0x2f   : > { %s154_s28 = sshll.u32 %s153_s17, 4  ;;  %s145_s4 = scalar_lea.sflag [#allocation3], %s2982_s25  ;;  %s155_s28 = int_to_ptr.hbm [resolvable:$true] %s154_s28 }
  0x30   : > { %s2766_s8 = sshra.s32 %s155_s28, 4  ;;  %s2773_s10 = scalar_lea.hbm %s3580_s0, 24  ;;  %s2767_s8 = int_to_ptr.hbm [resolvable:$true] %s2766_s8 }
  0x31   : > { %s2768_s27 = scalar_lea.hbm %s2767_s8, 12  ;;  %p2774_p7 = scmp.lt.s32.totalorder %s2767_s8, %s3580_s0 }
  0x32   : > { %p2769_p4 = scmp.ne.s32.totalorder %s2767_s8, %s2768_s27  ;;  %p2775_p8 = scmp.lt.s32.totalorder %s2773_s10, %s2768_s27 }
  0x34   : > { %p2771_p0 = pnand %p2769_p4, %p2740_p2  ;;  %p2776_p10 = por %p2775_p8, %p2774_p7 }
  0x36   : > { %p2772_p5 = pneg %p2771_p0 }
  0x38   : > { %p2777_p1 = pnand %p2776_p10, %p2772_p5 }
  0x3a   : > { %2780 = shalt.err (!%p2777_p1)
}
  0x3b   : > { %s2900_s25 = smov 64   ;;  %s2901_s11 = smov 4  }
  0x3c   : > { %2613 = dma.hbm_to_vmem [thread:$0]  (!%p2984_p13), %s155_s28, 192, %s157_s20, %s145_s4, %s2900_s25, %s2900_s25, %s2901_s11  }
  0x3d   : > { %s2506_s17 = sshll.u32 %s2896_s15, 5  ;;  %s192_s30 = scalar_lea.vmem [#allocation7], %s2131_s29 }
  0x3e   : > { %s197_s1 = scalar_lea.hbm %s3582_s2, %s2506_s17  ;;  %s200_s14 = sshll.u32 %s192_s30, 4  ;;  %s201_s14 = int_to_ptr.vmem [resolvable:$true] %s200_s14 }
  0x3f   : > { %s198_s7 = sshll.u32 %s197_s1, 4  ;;  %s2803_s28 = scalar_lea.hbm %s3582_s2, 64  ;;  %s199_s7 = int_to_ptr.hbm [resolvable:$true] %s198_s7 }
  0x40   : > { %s2796_s8 = sshra.s32 %s199_s7, 4  ;;  %s2797_s8 = int_to_ptr.hbm [resolvable:$true] %s2796_s8 }
  0x41   : > { %s2798_s27 = scalar_lea.hbm %s2797_s8, 32  ;;  %p2804_p7 = scmp.lt.s32.totalorder %s2797_s8, %s3582_s2 }
  0x42   : > { %p2799_p4 = scmp.ne.s32.totalorder %s2797_s8, %s2798_s27  ;;  %p2805_p8 = scmp.lt.s32.totalorder %s2803_s28, %s2798_s27 }
  0x44   : > { %p2801_p0 = pnand %p2799_p4, %p2740_p2  ;;  %p2806_p10 = por %p2805_p8, %p2804_p7 }
  0x46   : > { %p2802_p5 = pneg %p2801_p0 }
  0x48   : > { %p2807_p1 = pnand %p2806_p10, %p2802_p5 }
  0x4a   : > { %2810 = shalt.err (!%p2807_p1)
}
  0x4b   : > { %s2902_s29 = smov 128   ;;  %s2903_s5 = smov 8  }
  0x4c   : > { %2619 = dma.hbm_to_vmem [thread:$0]  (!%p2984_p13), %s199_s7, 512, %s201_s14, %s2995_s9, %s2902_s29, %s2902_s29, %s2903_s5  }
  0x4d   : > { %212 = sbr.rel (%p3015_p3) target bundleno = 2380 (0x94c), region = 32  ;;  %s3055_s25 = sand.u32 (!%p3015_p3), 1, %s2888_s13  }
  0x4e   : > { %s2600_s11 = smul.u32 (!%p3015_p3), 12, %s3055_s25  ;;  %s215_s17 = scalar_lea.sflag (!%p3015_p3), [#allocation3], %s3055_s25 }
  0x50   : > { %s3059_s19 = scalar_lea.vmem (!%p3015_p3), [#allocation2], %s2600_s11 }
  0x52   : > { %2871 = dma.done.wait (%p2966_p6), %s215_s17, 192  }
  0x53   : > { %2873 = vsyncadd (%p2966_p6), %s215_s17, 4294967104  ;;  %s224_s14 = sand.u32 1, %s2948_s16   ;;  %s2601_s26 = smul.u32 704, %s3055_s25 }
  0x54   : > { %s225_s9 = scalar_lea.sflag [#allocation6], %s224_s14 }
  0x55   : > { %s3067_s6 = scalar_lea.vmem [#allocation5], %s2601_s26 }
  0x56   : > { %2875 = dma.done.wait (%p2966_p6), %s225_s9, 11776  }
  0x57   : > { %2877 = vsyncadd (%p2966_p6), %s225_s9, 4294955520  ;;  %v280_v0 = vlaneseq  ;;  %v273_v2 = vld [vmem:[%s3059_s19] sm:$0xf]  ;;  %v2163_v8 = vld [vmem:[%s3067_s6 + $0x210] sm:$0xf]  ;;  %s2135_s22 = sshll.u32 %s3055_s25, 5 }
  0x58   : > { %v2167_v3 = vld [vmem:[%s3067_s6 + $0x268] sm:$0xf]  ;;  %v282_v4 = vperm.slane %v273_v2, 0  ;;  %v296_v5 = vperm.slane %v273_v2, 2  ;;  %v2514_v6 = vld [vmem:[%s3067_s6 + $0x290] sm:$0xf0] }
  0x59   : > { %v284_v1 = vshrl.u32 %v280_v0, 7  ;;  %v2168_v7 = vor.u32 %v2514_v6, %v2167_v3  ;;  %v2513_v9 = vld [vmem:[%s3067_s6 + $0x238] sm:$0xf0]  ;;  %v2159_v11 = vld [vmem:[%s3067_s6 + $0x1b8] sm:$0xf]  ;;  %v289_v14 = vperm.slane %v273_v2, 1 }
  0x5a   : > { %v2164_v10 = vor.u32 %v2513_v9, %v2163_v8  ;;  %v2512_v12 = vld [vmem:[%s3067_s6 + $0x1e0] sm:$0xf0]  ;;  %v303_v15 = vperm.slane %v273_v2, 3  ;;  %v2155_v16 = vld [vmem:[%s3067_s6 + $0x160] sm:$0xf]  ;;  %v281_v38 = vand.u32 127, %v280_v0 }
  0x5b   : > { %2667 = vset.pattern.permute.xlu0 %v284_v1  ;;  %2668 = vset.pattern.permute.xlu1 %v284_v1  ;;  %v2160_v13 = vor.u32 %v2512_v12, %v2159_v11  ;;  %v2511_v17 = vld [vmem:[%s3067_s6 + $0x188] sm:$0xf0]  ;;  %v2151_v21 = vld [vmem:[%s3067_s6 + $0x108] sm:$0xf]  ;;  %v2510_v22 = vld [vmem:[%s3067_s6 + $0x130] sm:$0xf0] }
  0x5c   : > { %2669 = vset.pattern.permute.xlu2 %v284_v1  ;;  %427 = vmatpush.bf16.msra.mxu0 %v2168_v7  ;;  %v274_v18 = vld [vmem:[%s3059_s19 + $0x4] sm:$0xf]  ;;  %v2156_v19 = vor.u32 %v2511_v17, %v2155_v16  ;;  %v2152_v23 = vor.u32 %v2510_v22, %v2151_v21  ;;  %v2147_v26 = vld [vmem:[%s3067_s6 + $0xb0] sm:$0xf]  ;;  %v2509_v27 = vld [vmem:[%s3067_s6 + $0xd8] sm:$0xf0] }
  0x5d   : > { %v336_v20 = vcvt.s32.f32 %v274_v18  ;;  %v2148_v28 = vor.u32 %v2509_v27, %v2147_v26  ;;  %v2143_v29 = vld [vmem:[%s3067_s6 + $0x58] sm:$0xf]  ;;  %v2508_v30 = vld [vmem:[%s3067_s6 + $0x80] sm:$0xf0]  ;;  %v2139_v31 = vld [vmem:[%s3067_s6] sm:$0xf] }
  0x5e   : > { %v2144_v32 = vor.u32 %v2508_v30, %v2143_v29  ;;  %v2507_v33 = vld [vmem:[%s3067_s6 + $0x28] sm:$0xf0]  ;;  %v2904_v41 = vmov 1.0|1.0   ;;  %s3094_s1 = scalar_lea.vmem [#allocation7], %s2135_s22  ;;  %s3531_s30 = scalar_lea.vmem [#allocation8], %s2135_s22 }
  0x5f   : > { %v351_v24 = vperm.slane %v336_v20, 2  ;;  %v358_v25 = vperm.slane %v336_v20, 3  ;;  %v2140_v34 = vor.u32 %v2507_v33, %v2139_v31  ;;  %v337_v35 = vperm.slane %v336_v20, 0  ;;  %v3097_v43 = vld [vmem:[%s3094_s1 + $0x8] sm:$0xff]  ;;  %v276_v52 = vld [vmem:[%s3094_s1] sm:$0xff]  ;;  %s2595_s7 = sshll.u32 %s2948_s16, 5 }
  0x60   : > { %428 = vmatpush.bf16.msra.mxu0 %v2164_v10  ;;  %v344_v37 = vperm.slane %v336_v20, 1  ;;  %v366_v44 = vrot.slane %v3097_v43, 7  ;;  %v374_v49 = vperm.slane %v3097_v43, 0  ;;  %v2345_v17 = vld [vmem:[%s3067_s6 + $0x298] sm:$0xf0]  ;;  %s2006_s10 = scalar_lea.hbm %s3583_s3, %s2595_s7  ;;  %s2007_s16 = sshll.u32 %s3531_s30, 4  ;;  %s2008_s16 = int_to_ptr.vmem [resolvable:$true] %s2007_s16 }
  0x61   : > { %v2351_v18 = vld [vmem:[%s3067_s6 + $0x274] sm:$0xf]  ;;  %v2558_v22 = vld [vmem:[%s3067_s6 + $0x278] sm:$0xf]  ;;  %v2554_v26 = vld [vmem:[%s3067_s6 + $0x23c] sm:$0xf0] }
  0x62   : > { %v368_v45 = vsub.f32 %v3097_v43, %v366_v44  ;;  %v2551_v27 = vld [vmem:[%s3067_s6 + $0x218] sm:$0xf]  ;;  %v2321_v29 = vld [vmem:[%s3067_s6 + $0x240] sm:$0xf0]  ;;  %v2327_v30 = vld [vmem:[%s3067_s6 + $0x21c] sm:$0xf] }
  0x63   : > { %287 = vperm.xlu0 %2667, %v282_v4   ;;  %301 = vperm.xlu1 %2668, %v296_v5   ;;  %v2555_v31 = vld [vmem:[%s3067_s6 + $0x244] sm:$0xf0]  ;;  %v2549_v44 = vld [vmem:[%s3067_s6 + $0x1ec] sm:$0xf0]  ;;  %s2009_s20 = sshll.u32 %s2006_s10, 4  ;;  %s1995_s28 = scalar_lea.sflag [#allocation4], %s3055_s25  ;;  %s2010_s20 = int_to_ptr.hbm [resolvable:$true] %s2009_s20 }
  0x64   : > { %429 = vmatpush.bf16.msra.mxu0 %v2160_v13  ;;  %342 = vperm.xlu2 %2669, %v337_v35   ;;  %v369_v47 = vperm.slane %v368_v45, 1  ;;  %v2343_v13 = vld [vmem:[%s3067_s6 + $0x26c] sm:$0xf]  ;;  %v2328_v33 = vor.u32 %v2555_v31, %v2327_v30  ;;  %v2199_v31 = vld [vmem:[%s3067_s6 + $0x5c] sm:$0xf]  ;;  %s2840_s4 = sshra.s32 %s2010_s20, 4  ;;  %s2841_s4 = int_to_ptr.hbm [resolvable:$true] %s2840_s4 }
  0x65   : > { %v2329_v35 = vld [vmem:[%s3067_s6 + $0x248] sm:$0xf0]  ;;  %s2842_s21 = scalar_lea.hbm %s2841_s4, 32  ;;  %s2846_s11 = scalar_lea.hbm %s3583_s3, 64 }
  0x66   : > { %p2843_p6 = scmp.ne.s32.totalorder %s2841_s4, %s2842_s21  ;;  %p2847_p3 = scmp.lt.s32.totalorder %s2841_s4, %s3583_s3 }
  0x67   : > { %p2848_p4 = scmp.lt.s32.totalorder %s2846_s11, %s2842_s21 }
  0x68   : > { %430 = vmatpush.bf16.msra.mxu0 %v2156_v19  ;;  %v2561_v19 = vld [vmem:[%s3067_s6 + $0x29c] sm:$0xf0]  ;;  %p2844_p13 = pnand %p2843_p6, %p2973_p11 }
  0x69   : > { %v2352_v21 = vor.u32 %v2561_v19, %v2351_v18  ;;  %p2849_p0 = por %p2848_p4, %p2847_p3 }
  0x6a   : > { %p2845_p2 = pneg %p2844_p13 }
  0x6b   : > { %294 = vperm.xlu0 %2667, %v289_v14   ;;  %308 = vperm.xlu1 %2668, %v303_v15   ;;  %v2560_v14 = vld [vmem:[%s3067_s6 + $0x294] sm:$0xf0]  ;;  %v2557_v15 = vld [vmem:[%s3067_s6 + $0x270] sm:$0xf] }
  0x6c   : > { %431 = vmatpush.bf16.msra.mxu0 %v2152_v23  ;;  %349 = vperm.xlu2 %2669, %v344_v37   ;;  %v2344_v16 = vor.u32 %v2560_v14, %v2343_v13  ;;  %v2348_v20 = vor.u32 %v2557_v15, %v2345_v17  ;;  %v2353_v23 = vld [vmem:[%s3067_s6 + $0x2a0] sm:$0xf0]  ;;  %v2295_v37 = vld [vmem:[%s3067_s6 + $0x1bc] sm:$0xf]  ;;  %v2223_v15 = vld [vmem:[%s3067_s6 + $0xb4] sm:$0xf]  ;;  %p2850_p5 = pnand %p2849_p0, %p2845_p2 }
  0x6d   : > { %883 = vmatpush.bf16.msra.mxu3 %v2352_v21  ;;  %v2527_v17 = vld [vmem:[%s3067_s6 + $0xb8] sm:$0xf]  ;;  %v2231_v21 = vld [vmem:[%s3067_s6 + $0xbc] sm:$0xf] }
  0x6e   : > { %845 = vmatpush.bf16.msra.mxu1 %v2344_v16  ;;  %864 = vmatpush.bf16.msra.mxu2 %v2348_v20  ;;  %v2530_v16 = vld [vmem:[%s3067_s6 + $0xdc] sm:$0xf0]  ;;  %v2225_v20 = vld [vmem:[%s3067_s6 + $0xe0] sm:$0xf0] }
  0x6f   : > { %v2224_v19 = vor.u32 %v2530_v16, %v2223_v15  ;;  %v2553_v15 = vld [vmem:[%s3067_s6 + $0x228] sm:$0xf] }
  0x70   : > { %432 = vmatpush.bf16.msra.mxu0 %v2148_v28 }
  0x71   : > { %884 = vmatpush.bf16.msra.mxu3 %v2328_v33  ;;  %v2521_v33 = vld [vmem:[%s3067_s6 + $0x60] sm:$0xf] }
  0x73   : > { %356 = vperm.xlu0 %2667, %v351_v24   ;;  %363 = vperm.xlu1 %2668, %v358_v25   ;;  %v2356_v24 = vor.u32 %v2558_v22, %v2353_v23  ;;  %v2319_v25 = vld [vmem:[%s3067_s6 + $0x214] sm:$0xf]  ;;  %v2228_v23 = vor.u32 %v2527_v17, %v2225_v20 }
  0x74   : > { %433 = vmatpush.bf16.msra.mxu0 %v2144_v32  ;;  %v2320_v28 = vor.u32 %v2554_v26, %v2319_v25  ;;  %v2324_v32 = vor.u32 %v2551_v27, %v2321_v29  ;;  %v2528_v25 = vld [vmem:[%s3067_s6 + $0xc0] sm:$0xf]  ;;  %v2233_v26 = vld [vmem:[%s3067_s6 + $0xe8] sm:$0xf0] }
  0x75   : > { %v2236_v30 = vor.u32 %v2528_v25, %v2233_v26 }
  0x76   : > { %846 = vmatpush.bf16.msra.mxu1 %v2320_v28  ;;  %865 = vmatpush.bf16.msra.mxu2 %v2324_v32  ;;  %v2524_v32 = vld [vmem:[%s3067_s6 + $0x84] sm:$0xf0] }
  0x78   : > { %434 = vmatpush.bf16.msra.mxu0 %v2140_v34  ;;  %v2552_v34 = vld [vmem:[%s3067_s6 + $0x220] sm:$0xf] }
  0x7c   : > { %902 = vmatpush.bf16.msrb.mxu0 %v2356_v24  ;;  %v2531_v24 = vld [vmem:[%s3067_s6 + $0xe4] sm:$0xf0] }
  0x7d   : > { %v2232_v29 = vor.u32 %v2531_v24, %v2231_v21 }
  0xbe   : > { %v343_v46 = vpop.permute.xlu2 %342 }
  0xbf   : > { %v370_v48 = vmul.f32 %v369_v47, %v343_v46 }
  0xc1   : > { %v375_v50 = vadd.f32 %v374_v49, %v370_v48  ;;  %v2305_v48 = vld [vmem:[%s3067_s6 + $0x1f0] sm:$0xf0] }
  0xc6   : > { %v350_v51 = vpop.permute.xlu2 %349 }
  0xc7   : > { %v371_v55 = vmul.f32 %v369_v47, %v350_v51  ;;  %v2542_v51 = vld [vmem:[%s3067_s6 + $0x18c] sm:$0xf0] }
  0xc9   : > { %v376_v58 = vadd.f32 %v374_v49, %v371_v55  ;;  %v2279_v55 = vld [vmem:[%s3067_s6 + $0x16c] sm:$0xf] }
  0xd5   : > { %v288_v36 = vpop.permute.xlu0 %287  ;;  %v302_v40 = vpop.permute.xlu1 %301 }
  0xd6   : > { %vm310_vm0 = vcmp.eq.s32.totalorder %v288_v36, %v281_v38  ;;  %vm312_vm3 = vcmp.eq.s32.totalorder %v302_v40, %v281_v38  ;;  %v2332_v36 = vor.u32 %v2552_v34, %v2329_v35  ;;  %v2200_v35 = vor.u32 %v2524_v32, %v2199_v31 }
  0xd8   : > { %903 = vmatpush.bf16.msrb.mxu0 %v2332_v36  ;;  %v2201_v36 = vld [vmem:[%s3067_s6 + $0x88] sm:$0xf0] }
  0xdd   : > { %v295_v39 = vpop.permute.xlu0 %294  ;;  %v309_v42 = vpop.permute.xlu1 %308 }
  0xde   : > { %vm311_vm1 = vcmp.eq.s32.totalorder %v295_v39, %v281_v38  ;;  %vm313_vm4 = vcmp.eq.s32.totalorder %v309_v42, %v281_v38  ;;  %v2548_v38 = vld [vmem:[%s3067_s6 + $0x1e4] sm:$0xf0]  ;;  %v2545_v39 = vld [vmem:[%s3067_s6 + $0x1c0] sm:$0xf]  ;;  %v2303_v42 = vld [vmem:[%s3067_s6 + $0x1c4] sm:$0xf] }
  0xdf   : > { %vm2169_vm2 = vmpackc.low %vm311_vm1, %vm310_vm0  ;;  %v2296_v40 = vor.u32 %v2548_v38, %v2295_v37  ;;  %v2304_v46 = vor.u32 %v2549_v44, %v2303_v42  ;;  %v2207_v37 = vld [vmem:[%s3067_s6 + $0x64] sm:$0xf]  ;;  %v2525_v38 = vld [vmem:[%s3067_s6 + $0x8c] sm:$0xf0] }
  0xe0   : > { %2170 = vmatmul.msk.bf16.vlgmr.msra.gmra.mxu0 %vm2169_vm2, %v2904_v41  ;;  %vm2171_vm5 = vmpackc.low %vm313_vm4, %vm312_vm3  ;;  %v2209_v42 = vld [vmem:[%s3067_s6 + $0x90] sm:$0xf0]  ;;  %vm1110_vm2 = vcmask 1043456   ;;  %vm1058_vm3 = vcmask 64512  }
  0xe1   : > { %847 = vmatpush.bf16.msra.mxu1 %v2296_v40  ;;  %885 = vmatpush.bf16.msra.mxu3 %v2304_v46  ;;  %v2208_v40 = vor.u32 %v2525_v38, %v2207_v37 }
  0xe5   : > { %v357_v59 = vpop.permute.xlu0 %356  ;;  %v364_v2 = vpop.permute.xlu1 %363 }
  0xe6   : > { %v372_v62 = vmul.f32 %v369_v47, %v357_v59  ;;  %v373_v5 = vmul.f32 %v369_v47, %v364_v2  ;;  %v2546_v47 = vld [vmem:[%s3067_s6 + $0x1c8] sm:$0xf]  ;;  %v2533_v2 = vld [vmem:[%s3067_s6 + $0x110] sm:$0xf] }
  0xe8   : > { %v377_v1 = vadd.f32 %v374_v49, %v372_v62  ;;  %v378_v8 = vadd.f32 %v374_v49, %v373_v5  ;;  %v2308_v49 = vor.u32 %v2546_v47, %v2305_v48  ;;  %v2255_v5 = vld [vmem:[%s3067_s6 + $0x114] sm:$0xf]  ;;  %v2175_v47 = vld [vmem:[%s3067_s6 + $0x4] sm:$0xf]  ;;  %v2518_v48 = vld [vmem:[%s3067_s6 + $0x2c] sm:$0xf0] }
  0xea   : > { %904 = vmatpush.bf16.msrb.mxu0 %v2308_v49  ;;  %v2515_v49 = vld [vmem:[%s3067_s6 + $0x8] sm:$0xf] }
  0xf0   : > { %2172 = vmatmul.msk.bf16.gmra.mxu0 %vm2171_vm5, %v2904_v41  ;;  %v2297_v41 = vld [vmem:[%s3067_s6 + $0x1e8] sm:$0xf0] }
  0xf1   : > { %v2300_v45 = vor.u32 %v2545_v39, %v2297_v41  ;;  %v2204_v39 = vor.u32 %v2521_v33, %v2201_v36  ;;  %v2522_v41 = vld [vmem:[%s3067_s6 + $0x68] sm:$0xf]  ;;  %v2313_v33 = vld [vmem:[%s3067_s6 + $0x1f8] sm:$0xf0] }
  0xf3   : > { %866 = vmatpush.bf16.msra.mxu2 %v2300_v45  ;;  %v2212_v45 = vor.u32 %v2522_v41, %v2209_v42  ;;  %v2544_v41 = vld [vmem:[%s3067_s6 + $0x19c] sm:$0xf0] }
 0x15d   : > { %v436_v53 = vpop.f32.mrf.mxu0 }
 0x15e   : > { %v437_v54 = vadd.f32 %v436_v53, %v375_v50  ;;  %v2271_v50 = vld [vmem:[%s3067_s6 + $0x164] sm:$0xf] }
 0x15f   : > { %v2272_v53 = vor.u32 %v2542_v51, %v2271_v50 }
 0x160   : > { %v3103_v56 = vadd.f32 %v437_v54, %v276_v52  ;;  %v2273_v54 = vld [vmem:[%s3067_s6 + $0x190] sm:$0xf0] }
 0x161   : > { %848 = vmatpush.bf16.msra.mxu1 %v2272_v53  ;;  %v2177_v53 = vld [vmem:[%s3067_s6 + $0x30] sm:$0xf0] }
 0x162   : > { %450 = vadd.xlane.f32.xlu2 %v3103_v56  ;;  %v458_v57 = vmul.f32 %v3103_v56, %v3103_v56 }
 0x164   : > { %462 = vadd.xlane.f32.xlu1 %v458_v57  ;;  %v2543_v57 = vld [vmem:[%s3067_s6 + $0x194] sm:$0xf0] }
 0x165   : > { %v438_v60 = vpop.f32.mrf.mxu0  ;;  %v2280_v59 = vor.u32 %v2543_v57, %v2279_v55  ;;  %v2180_v55 = vor.u32 %v2515_v49, %v2177_v53  ;;  %v2183_v57 = vld [vmem:[%s3067_s6 + $0xc] sm:$0xf] }
 0x166   : > { %v439_v61 = vadd.f32 %v438_v60, %v376_v58  ;;  %v2540_v60 = vld [vmem:[%s3067_s6 + $0x170] sm:$0xf] }
 0x167   : > { %886 = vmatpush.bf16.msra.mxu3 %v2280_v59  ;;  %v2516_v59 = vld [vmem:[%s3067_s6 + $0x10] sm:$0xf] }
 0x168   : > { %v3108_v63 = vadd.f32 %v439_v61, %v276_v52  ;;  %v2281_v61 = vld [vmem:[%s3067_s6 + $0x198] sm:$0xf0] }
 0x169   : > { %v2284_v62 = vor.u32 %v2540_v60, %v2281_v61  ;;  %v2185_v61 = vld [vmem:[%s3067_s6 + $0x38] sm:$0xf0] }
 0x16a   : > { %452 = vadd.xlane.f32.xlu0 %v3108_v63  ;;  %v459_v0 = vmul.f32 %v3108_v63, %v3108_v63 }
 0x16b   : > { %905 = vmatpush.bf16.msrb.mxu0 %v2284_v62 }
 0x16c   : > { %464 = vadd.xlane.f32.xlu2 %v459_v0  ;;  %v2247_v0 = vld [vmem:[%s3067_s6 + $0x10c] sm:$0xf] }
 0x16d   : > { %v441_v3 = vpop.f32.mrf.mxu0 }
 0x16e   : > { %v442_v4 = vadd.f32 %v441_v3, %v377_v1  ;;  %v2536_v1 = vld [vmem:[%s3067_s6 + $0x134] sm:$0xf0] }
 0x16f   : > { %v2248_v3 = vor.u32 %v2536_v1, %v2247_v0  ;;  %v2188_v1 = vor.u32 %v2516_v59, %v2185_v61  ;;  %v2538_v59 = vld [vmem:[%s3067_s6 + $0x144] sm:$0xf0] }
 0x170   : > { %v3113_v6 = vadd.f32 %v442_v4, %v276_v52  ;;  %v2249_v4 = vld [vmem:[%s3067_s6 + $0x138] sm:$0xf0] }
 0x171   : > { %849 = vmatpush.bf16.msra.mxu1 %v2248_v3  ;;  %v2562_v3 = vld [vmem:[%s3067_s6 + $0x2a4] sm:$0xf0] }
 0x172   : > { %v460_v7 = vmul.f32 %v3113_v6, %v3113_v6 }
 0x174   : > { %454 = vadd.xlane.f32.xlu2 %v3113_v6  ;;  %466 = vadd.xlane.f32.xlu1 %v460_v7  ;;  %v2537_v7 = vld [vmem:[%s3067_s6 + $0x13c] sm:$0xf0] }
 0x175   : > { %v443_v9 = vpop.f32.mrf.mxu0  ;;  %850 = vmatpush.bf16.msra.mxu1 %v2224_v19 }
 0x176   : > { %v444_v10 = vadd.f32 %v443_v9, %v378_v8  ;;  %v2252_v8 = vor.u32 %v2533_v2, %v2249_v4  ;;  %v2256_v9 = vor.u32 %v2537_v7, %v2255_v5  ;;  %v2359_v2 = vld [vmem:[%s3067_s6 + $0x27c] sm:$0xf]  ;;  %v2559_v4 = vld [vmem:[%s3067_s6 + $0x280] sm:$0xf] }
 0x177   : > { %v2360_v7 = vor.u32 %v2562_v3, %v2359_v2 }
 0x178   : > { %v3118_v11 = vadd.f32 %v444_v10, %v276_v52  ;;  %v2539_v52 = vld [vmem:[%s3067_s6 + $0x168] sm:$0xf]  ;;  %v2534_v10 = vld [vmem:[%s3067_s6 + $0x118] sm:$0xf]  ;;  %887 = vmatpush.bf16.msra.mxu3 %v2256_v9 }
 0x179   : > { %v2276_v58 = vor.u32 %v2539_v52, %v2273_v54  ;;  %851 = vmatpush.bf16.msra.mxu1 %v2200_v35  ;;  %v2176_v52 = vor.u32 %v2518_v48, %v2175_v47  ;;  %v2289_v47 = vld [vmem:[%s3067_s6 + $0x1a0] sm:$0xf0] }
 0x17a   : > { %456 = vadd.xlane.f32.xlu0 %v3118_v11  ;;  %v461_v12 = vmul.f32 %v3118_v11, %v3118_v11 }
 0x17b   : > { %867 = vmatpush.bf16.msra.mxu2 %v2276_v58  ;;  %v2519_v58 = vld [vmem:[%s3067_s6 + $0x34] sm:$0xf0] }
 0x17c   : > { %468 = vadd.xlane.f32.xlu2 %v461_v12  ;;  %v2257_v12 = vld [vmem:[%s3067_s6 + $0x140] sm:$0xf0]  ;;  %888 = vmatpush.bf16.msra.mxu3 %v2232_v29  ;;  %v2184_v0 = vor.u32 %v2519_v58, %v2183_v57  ;;  %v2550_v29 = vld [vmem:[%s3067_s6 + $0x1f4] sm:$0xf0]  ;;  %v2263_v58 = vld [vmem:[%s3067_s6 + $0x11c] sm:$0xf] }
 0x17d   : > { %v2260_v13 = vor.u32 %v2534_v10, %v2257_v12  ;;  %852 = vmatpush.bf16.msra.mxu1 %v2176_v52 }
 0x17f   : > { %868 = vmatpush.bf16.msra.mxu2 %v2252_v8  ;;  %906 = vmatpush.bf16.msrb.mxu0 %v2260_v13  ;;  %v2361_v8 = vld [vmem:[%s3067_s6 + $0x2a8] sm:$0xf0]  ;;  %v2335_v13 = vld [vmem:[%s3067_s6 + $0x224] sm:$0xf] }
 0x180   : > { %889 = vmatpush.bf16.msra.mxu3 %v2208_v40  ;;  %v2364_v9 = vor.u32 %v2559_v4, %v2361_v8  ;;  %v2287_v40 = vld [vmem:[%s3067_s6 + $0x174] sm:$0xf]  ;;  %v2239_v4 = vld [vmem:[%s3067_s6 + $0xc4] sm:$0xf] }
 0x181   : > { %921 = vmatpush.bf16.msrb.mxu1 %v2360_v7 }
 0x183   : > { %869 = vmatpush.bf16.msra.mxu2 %v2228_v23  ;;  %907 = vmatpush.bf16.msrb.mxu0 %v2236_v30  ;;  %v2547_v30 = vld [vmem:[%s3067_s6 + $0x1d0] sm:$0xf] }
 0x184   : > { %890 = vmatpush.bf16.msra.mxu3 %v2184_v0  ;;  %v2316_v35 = vor.u32 %v2547_v30, %v2313_v33  ;;  %v2264_v0 = vor.u32 %v2538_v59, %v2263_v58  ;;  %v2191_v30 = vld [vmem:[%s3067_s6 + $0x14] sm:$0xf] }
 0x187   : > { %870 = vmatpush.bf16.msra.mxu2 %v2204_v39  ;;  %908 = vmatpush.bf16.msrb.mxu0 %v2212_v45  ;;  %v2288_v45 = vor.u32 %v2544_v41, %v2287_v40 }
 0x18b   : > { %871 = vmatpush.bf16.msra.mxu2 %v2180_v55  ;;  %909 = vmatpush.bf16.msrb.mxu0 %v2188_v1 }
 0x18f   : > { %940 = vmatpush.bf16.msrb.mxu2 %v2364_v9 }
 0x1d5   : > { %v451_v14 = vpop.xlane.xlu2 %450 }
 0x1d6   : > { %v3166_v18 = vmul.f32 0.03125, %v451_v14  ;;  %v2556_v14 = vld [vmem:[%s3067_s6 + $0x24c] sm:$0xf0] }
 0x1d7   : > { %v463_v22 = vpop.xlane.xlu1 %462  ;;  %v2336_v21 = vor.u32 %v2556_v14, %v2335_v13  ;;  %v2241_v13 = vld [vmem:[%s3067_s6 + $0xf0] sm:$0xf0] }
 0x1d8   : > { %v478_v27 = vmul.f32 %v3166_v18, %v3166_v18  ;;  %v474_v28 = vmul.f32 0.03125, %v463_v22  ;;  %v2337_v22 = vld [vmem:[%s3067_s6 + $0x250] sm:$0xf0]  ;;  %v490_v7 = vsub.f32 %v3103_v56, %v3166_v18 }
 0x1d9   : > { %v2340_v24 = vor.u32 %v2553_v15, %v2337_v22  ;;  %922 = vmatpush.bf16.msrb.mxu1 %v2336_v21  ;;  %v2215_v15 = vld [vmem:[%s3067_s6 + $0x6c] sm:$0xf]  ;;  %v2523_v22 = vld [vmem:[%s3067_s6 + $0x70] sm:$0xf] }
 0x1da   : > { %v482_v34 = vsub.f32 %v474_v28, %v478_v27  ;;  %v2311_v28 = vld [vmem:[%s3067_s6 + $0x1cc] sm:$0xf] }
 0x1db   : > { %941 = vmatpush.bf16.msrb.mxu2 %v2340_v24  ;;  %v2312_v32 = vor.u32 %v2550_v29, %v2311_v28  ;;  %v2217_v24 = vld [vmem:[%s3067_s6 + $0x98] sm:$0xf0]  ;;  %v547_v28 = vperm.slane %v3097_v43, 3 }
 0x1dc   : > { %v486_v44 = vmax.f32 %v482_v34, 0.0 }
 0x1dd   : > { %v453_v46 = vpop.xlane.xlu0 %452  ;;  %923 = vmatpush.bf16.msrb.mxu1 %v2312_v32 }
 0x1de   : > { %v3186_v50 = vadd.f32 1e-12, %v486_v44  ;;  %v3188_v51 = vmul.f32 0.03125, %v453_v46  ;;  %v2541_v46 = vld [vmem:[%s3067_s6 + $0x178] sm:$0xf] }
 0x1df   : > { %v465_v54 = vpop.xlane.xlu2 %464  ;;  %942 = vmatpush.bf16.msrb.mxu2 %v2316_v35  ;;  %v2292_v55 = vor.u32 %v2541_v46, %v2289_v47 }
 0x1e0   : > { %2670 = vrsqrt.f32 %v3186_v50  ;;  %v479_v60 = vmul.f32 %v3188_v51, %v3188_v51  ;;  %v475_v62 = vmul.f32 0.03125, %v465_v54  ;;  %vm504_vm7 = vweird.f32 %v3186_v50 }
 0x1e1   : > { %924 = vmatpush.bf16.msrb.mxu1 %v2288_v45 }
 0x1e2   : > { %v483_v5 = vsub.f32 %v475_v62, %v479_v60  ;;  %v2535_v60 = vld [vmem:[%s3067_s6 + $0x120] sm:$0xf] }
 0x1e3   : > { %943 = vmatpush.bf16.msrb.mxu2 %v2292_v55 }
 0x1e4   : > { %v487_v10 = vmax.f32 %v483_v5, 0.0  ;;  %v2532_v5 = vld [vmem:[%s3067_s6 + $0xec] sm:$0xf0] }
 0x1e5   : > { %925 = vmatpush.bf16.msrb.mxu1 %v2264_v0  ;;  %v2240_v9 = vor.u32 %v2532_v5, %v2239_v4 }
 0x1e6   : > { %v3202_v12 = vpop.eup %2670  ;;  %v3209_v17 = vadd.f32 1e-12, %v487_v10  ;;  %v2529_v10 = vld [vmem:[%s3067_s6 + $0xc8] sm:$0xf] }
 0x1e7   : > { %v499_v16 = vmul.f32 %v3202_v12, %v3186_v50  ;;  %v455_v19 = vpop.xlane.xlu2 %454  ;;  %v467_v20 = vpop.xlane.xlu1 %466  ;;  %vm505_vm6 = vweird.f32 %v3202_v12  ;;  %v2265_v50 = vld [vmem:[%s3067_s6 + $0x148] sm:$0xf0]  ;;  %v2244_v56 = vor.u32 %v2529_v10, %v2241_v13 }
 0x1e8   : > { %v3212_v23 = vmul.f32 0.03125, %v455_v19  ;;  %2672 = vrsqrt.f32 %v3209_v17  ;;  %v476_v26 = vmul.f32 0.03125, %v467_v20  ;;  %vm3242_vm8 = vmor %vm504_vm7, %vm505_vm6  ;;  %v2268_v3 = vor.u32 %v2535_v60, %v2265_v50 }
 0x1e9   : > { %v500_v25 = vmul.f32 %v3202_v12, %v499_v16  ;;  %v2526_v16 = vld [vmem:[%s3067_s6 + $0x94] sm:$0xf0]  ;;  %vm514_vm10 = vweird.f32 %v3209_v17  ;;  %926 = vmatpush.bf16.msrb.mxu1 %v2240_v9 }
 0x1ea   : > { %v480_v27 = vmul.f32 %v3212_v23, %v3212_v23  ;;  %944 = vmatpush.bf16.msrb.mxu2 %v2268_v3 }
 0x1eb   : > { %v501_v31 = vmul.f32 0.5, %v500_v25  ;;  %v491_v25 = vsub.f32 %v3108_v63, %v3188_v51 }
 0x1ec   : > { %v484_v34 = vsub.f32 %v476_v26, %v480_v27  ;;  %v2216_v27 = vor.u32 %v2526_v16, %v2215_v15 }
 0x1ed   : > { %v502_v36 = vsub.f32 1.5, %v501_v31  ;;  %v457_v37 = vpop.xlane.xlu0 %456  ;;  %v2520_v31 = vld [vmem:[%s3067_s6 + $0x3c] sm:$0xf0] }
 0x1ee   : > { %v488_v38 = vmax.f32 %v484_v34, 0.0  ;;  %v3222_v39 = vmul.f32 0.03125, %v457_v37  ;;  %v2673_v42 = vpop.eup %2672  ;;  %945 = vmatpush.bf16.msrb.mxu2 %v2244_v56  ;;  %v2220_v34 = vor.u32 %v2523_v22, %v2217_v24  ;;  %927 = vmatpush.bf16.msrb.mxu1 %v2216_v27  ;;  %v2192_v35 = vor.u32 %v2520_v31, %v2191_v30  ;;  %v2193_v37 = vld [vmem:[%s3067_s6 + $0x40] sm:$0xf0] }
 0x1ef   : > { %v469_v44 = vpop.xlane.xlu2 %468  ;;  %v503_v48 = vmul.f32 %v3202_v12, %v502_v36  ;;  %v509_v49 = vmul.f32 %v2673_v42, %v3209_v17  ;;  %vm515_vm9 = vweird.f32 %v2673_v42  ;;  %v2517_v36 = vld [vmem:[%s3067_s6 + $0x18] sm:$0xf] }
 0x1f0   : > { %v3231_v52 = vadd.f32 1e-12, %v488_v38  ;;  %v481_v53 = vmul.f32 %v3222_v39, %v3222_v39  ;;  %v477_v54 = vmul.f32 0.03125, %v469_v44  ;;  %vm516_vm11 = vmor %vm514_vm10, %vm515_vm9  ;;  %v2196_v46 = vor.u32 %v2517_v36, %v2193_v37 }
 0x1f1   : > { %v510_v57 = vmul.f32 %v2673_v42, %v509_v49  ;;  %v507_v1 = vsel %vm3242_vm8, %v3202_v12, %v503_v48  ;;  %v3259_v12 = vperm.slane %v3097_v43, 2 }
 0x1f2   : > { %2674 = vrsqrt.f32 %v3231_v52  ;;  %v485_v62 = vsub.f32 %v477_v54, %v481_v53  ;;  %v538_v19 = vmul.f32 %v507_v1, %v490_v7  ;;  %946 = vmatpush.bf16.msrb.mxu2 %v2220_v34  ;;  %928 = vmatpush.bf16.msrb.mxu1 %v2192_v35  ;;  %vm524_vm13 = vweird.f32 %v3231_v52 }
 0x1f3   : > { %v511_v2 = vmul.f32 0.5, %v510_v57  ;;  %v492_v53 = vsub.f32 %v3113_v6, %v3212_v23 }
 0x1f4   : > { %v489_v8 = vmax.f32 %v485_v62, 0.0  ;;  %v543_v17 = vmul.f32 %v3259_v12, %v538_v19 }
 0x1f5   : > { %v512_v14 = vsub.f32 1.5, %v511_v2 }
 0x1f6   : > { %v497_v20 = vadd.f32 1e-12, %v489_v8  ;;  %v3274_v40 = vadd.f32 %v547_v28, %v543_v17  ;;  %947 = vmatpush.bf16.msrb.mxu2 %v2196_v46 }
 0x1f7   : > { %v513_v21 = vmul.f32 %v2673_v42, %v512_v14 }
 0x1f8   : > { %v2675_v18 = vpop.eup %2674  ;;  %2676 = vrsqrt.f32 %v497_v20  ;;  %vm534_vm0 = vweird.f32 %v497_v20 }
 0x1f9   : > { %v519_v26 = vmul.f32 %v2675_v18, %v3231_v52  ;;  %v517_v29 = vsel %vm516_vm11, %v2673_v42, %v513_v21  ;;  %vm525_vm12 = vweird.f32 %v2675_v18  ;;  %v493_v52 = vsub.f32 %v3118_v11, %v3222_v39  ;;  %v3294_v39 = vld [vmem:[%s3094_s1 + $0x10] sm:$0xff] }
 0x1fa   : > { %v539_v32 = vmul.f32 %v517_v29, %v491_v25  ;;  %vm526_vm14 = vmor %vm524_vm13, %vm525_vm12  ;;  %v968_v0 = vperm.slane %v3294_v39, 4  ;;  %v977_v50 = vperm.slane %v3294_v39, 5  ;;  %v959_v4 = vperm.slane %v3294_v39, 3 }
 0x1fb   : > { %v520_v33 = vmul.f32 %v2675_v18, %v519_v26 }
 0x1fc   : > { %v544_v63 = vmul.f32 %v3259_v12, %v539_v32  ;;  %v1211_v32 = vperm.slane %v3294_v39, 7 }
 0x1fd   : > { %v521_v51 = vmul.f32 0.5, %v520_v33 }
 0x1fe   : > { %v2677_v38 = vpop.eup %2676  ;;  %v3276_v43 = vadd.f32 %v547_v28, %v544_v63 }
 0x1ff   : > { %v522_v41 = vsub.f32 1.5, %v521_v51  ;;  %v529_v42 = vmul.f32 %v2677_v38, %v497_v20  ;;  %vm535_vm15 = vweird.f32 %v2677_v38 }
 0x200   : > { %v555_v45 = vpack.c.bf16 %v3276_v43, %v3274_v40  ;;  %vm536_vm1 = vmor %vm534_vm0, %vm535_vm15 }
 0x201   : > { %v523_v44 = vmul.f32 %v2675_v18, %v522_v41  ;;  %v530_v47 = vmul.f32 %v2677_v38, %v529_v42 }
 0x202   : > { %853 = vmatmul.bf16.vlgmr.msra.gmra.mxu1 %v555_v45  ;;  %872 = vmatmul.bf16.vlgmr.msra.gmra.mxu2 %v555_v45 }
 0x203   : > { %v527_v48 = vsel %vm526_vm14, %v2675_v18, %v523_v44  ;;  %v531_v49 = vmul.f32 0.5, %v530_v47  ;;  %891 = vmatmul.bf16.vlgmr.msra.gmra.mxu3 %v555_v45  ;;  %910 = vmatmul.bf16.vlgmr.msrb.gmra.mxu0 %v555_v45 }
 0x204   : > { %v540_v55 = vmul.f32 %v527_v48, %v492_v53 }
 0x205   : > { %v532_v54 = vsub.f32 1.5, %v531_v49 }
 0x206   : > { %v545_v59 = vmul.f32 %v3259_v12, %v540_v55 }
 0x207   : > { %v533_v57 = vmul.f32 %v2677_v38, %v532_v54 }
 0x208   : > { %v3287_v62 = vadd.f32 %v547_v28, %v545_v59 }
 0x209   : > { %v537_v58 = vsel %vm536_vm1, %v2677_v38, %v533_v57 }
 0x20a   : > { %v541_v60 = vmul.f32 %v537_v58, %v493_v52 }
 0x20c   : > { %v546_v61 = vmul.f32 %v3259_v12, %v541_v60 }
 0x20e   : > { %v3289_v6 = vadd.f32 %v547_v28, %v546_v61 }
 0x210   : > { %v556_v23 = vpack.c.bf16 %v3289_v6, %v3287_v62 }
 0x212   : > { %858 = vmatmul.bf16.gmra.mxu1 %v556_v23  ;;  %877 = vmatmul.bf16.gmra.mxu2 %v556_v23 }
 0x213   : > { %896 = vmatmul.bf16.gmra.mxu3 %v556_v23  ;;  %915 = vmatmul.bf16.gmra.mxu0 %v556_v23 }
 0x222   : > { %929 = vmatmul.bf16.vlgmr.msrb.gmra.mxu1 %v555_v45  ;;  %948 = vmatmul.bf16.vlgmr.msrb.gmra.mxu2 %v555_v45 }
 0x232   : > { %934 = vmatmul.bf16.gmra.mxu1 %v556_v23  ;;  %953 = vmatmul.bf16.gmra.mxu2 %v556_v23  ;;  %v275_v23 = vld [vmem:[%s3059_s19 + $0x8] sm:$0xf] }
 0x27f   : > { %v854_v11 = vpop.f32.mrf.mxu1 }
 0x280   : > { %v960_v10 = vadd.f32 %v959_v4, %v854_v11  ;;  %v3304_v60 = vpop.f32.mrf.mxu0  ;;  %v552_v11 = vcvt.s32.f32 %v275_v23 }
 0x282   : > { %v964_v12 = vpack.c.bf16 %v960_v10, %v960_v10 }
 0x285   : > { %v873_v1 = vpop.f32.mrf.mxu2 }
 0x286   : > { %v969_v2 = vadd.f32 %v968_v0, %v873_v1  ;;  %v892_v3 = vpop.f32.mrf.mxu3 }
 0x287   : > { %v978_v5 = vadd.f32 %v977_v50, %v892_v3  ;;  %v856_v7 = vpop.f32.mrf.mxu1 }
 0x288   : > { %v973_v8 = vpack.c.bf16 %v969_v2, %v969_v2  ;;  %v961_v30 = vadd.f32 %v959_v4, %v856_v7  ;;  %v3306_v61 = vpop.f32.mrf.mxu0 }
 0x289   : > { %v982_v9 = vpack.c.bf16 %v978_v5, %v978_v5 }
 0x28a   : > { %993 = vmatpush.bf16.xpose.msrb.mxu3 %v973_v8  ;;  %v965_v51 = vpack.c.bf16 %v961_v30, %v961_v30 }
 0x28b   : > { %v1112_v13 = vsel %vm1110_vm2, %v982_v9, 0 }
 0x28c   : > { %1121 = vmatpush.bf16.msra.mxu2 %v1112_v13 }
 0x28d   : > { %v875_v14 = vpop.f32.mrf.mxu2 }
 0x28e   : > { %v970_v15 = vadd.f32 %v968_v0, %v875_v14  ;;  %v894_v16 = vpop.f32.mrf.mxu3 }
 0x28f   : > { %v979_v19 = vadd.f32 %v977_v50, %v894_v16  ;;  %v859_v20 = vpop.f32.mrf.mxu1 }
 0x290   : > { %v974_v56 = vpack.c.bf16 %v970_v15, %v970_v15  ;;  %v962_v31 = vadd.f32 %v959_v4, %v859_v20 }
 0x291   : > { %v983_v18 = vpack.c.bf16 %v979_v19, %v979_v19  ;;  %994 = vmatmul.bf16.vlgmr.msrb.gmra.mxu3 %v964_v12 }
 0x292   : > { %1006 = vmatpush.bf16.xpose.msra.mxu3 %v974_v56  ;;  %v966_v35 = vpack.c.bf16 %v962_v31, %v962_v31 }
 0x293   : > { %v1131_v21 = vsel %vm1110_vm2, %v983_v18, 0 }
 0x295   : > { %v878_v22 = vpop.f32.mrf.mxu2 }
 0x296   : > { %v971_v24 = vadd.f32 %v968_v0, %v878_v22  ;;  %v897_v25 = vpop.f32.mrf.mxu3 }
 0x297   : > { %v980_v26 = vadd.f32 %v977_v50, %v897_v25  ;;  %v861_v27 = vpop.f32.mrf.mxu1 }
 0x298   : > { %v975_v28 = vpack.c.bf16 %v971_v24, %v971_v24  ;;  %v963_v45 = vadd.f32 %v959_v4, %v861_v27 }
 0x299   : > { %v984_v29 = vpack.c.bf16 %v980_v26, %v980_v26 }
 0x29a   : > { %1140 = vmatpush.bf16.msrb.mxu3 %v1131_v21  ;;  %1019 = vmatpush.bf16.xpose.msra.mxu0 %v975_v28  ;;  %v967_v47 = vpack.c.bf16 %v963_v45, %v963_v45 }
 0x29b   : > { %v1150_v17 = vsel %vm1110_vm2, %v984_v29, 0 }
 0x29d   : > { %v880_v33 = vpop.f32.mrf.mxu2 }
 0x29e   : > { %v972_v34 = vadd.f32 %v968_v0, %v880_v33  ;;  %v899_v63 = vpop.f32.mrf.mxu3  ;;  %v553_v0 = vsub.f32 1.0, %v552_v11 }
 0x29f   : > { %v981_v36 = vadd.f32 %v977_v50, %v899_v63  ;;  %v930_v37 = vpop.f32.mrf.mxu1  ;;  %v3309_v50 = vpop.f32.mrf.mxu0 }
 0x2a0   : > { %v976_v38 = vpack.c.bf16 %v972_v34, %v972_v34  ;;  %v1212_v41 = vadd.f32 %v1211_v32, %v930_v37  ;;  %v3311_v1 = vmul.f32 -1e+09, %v553_v0 }
 0x2a1   : > { %v985_v42 = vpack.c.bf16 %v981_v36, %v981_v36  ;;  %1007 = vmatmul.bf16.vlgmr.msra.gmra.mxu3 %v965_v51  ;;  %1020 = vmatmul.bf16.vlgmr.msra.gmra.mxu0 %v966_v35 }
 0x2a2   : > { %1159 = vmatpush.bf16.msrb.mxu0 %v1150_v17  ;;  %v1216_v44 = vpack.c.bf16 %v1212_v41, %v1212_v41  ;;  %1032 = vmatpush.bf16.xpose.msra.mxu1 %v976_v38  ;;  %v1046_v2 = vperm.slane %v3311_v1, 0  ;;  %v1044_v9 = vrot.slane %v3311_v1, 2  ;;  %v1043_v16 = vrot.slane %v3311_v1, 1 }
 0x2a3   : > { %v1169_v46 = vsel %vm1110_vm2, %v985_v42, 0  ;;  %v1045_v19 = vrot.slane %v3311_v1, 3 }
 0x2a4   : > { %1236 = vmatpush.bf16.xpose.msrb.mxu2 %v1216_v44  ;;  %v3320_v13 = vperm.slane %v1044_v9, 0  ;;  %v3326_v56 = vperm.slane %v1043_v16, 0 }
 0x2a5   : > { %v3328_v22 = vperm.slane %v1045_v19, 0 }
 0x2a7   : > { %v932_v48 = vpop.f32.mrf.mxu1  ;;  %v3314_v5 = vpop.f32.mrf.mxu0 }
 0x2a8   : > { %v1213_v49 = vadd.f32 %v1211_v32, %v932_v48 }
 0x2a9   : > { %1033 = vmatmul.bf16.vlgmr.msra.gmra.mxu1 %v967_v47 }
 0x2aa   : > { %1178 = vmatpush.bf16.msrb.mxu1 %v1169_v46  ;;  %v1217_v53 = vpack.c.bf16 %v1213_v49, %v1213_v49 }
 0x2ac   : > { %1249 = vmatpush.bf16.xpose.msra.mxu3 %v1217_v53 }
 0x2af   : > { %v935_v54 = vpop.f32.mrf.mxu1 }
 0x2b0   : > { %v1214_v55 = vadd.f32 %v1211_v32, %v935_v54 }
 0x2b2   : > { %v1218_v57 = vpack.c.bf16 %v1214_v55, %v1214_v55 }
 0x2b4   : > { %1262 = vmatpush.bf16.xpose.msra.mxu0 %v1218_v57  ;;  %v949_v57 = vpop.f32.mrf.mxu2 }
 0x2b7   : > { %v937_v52 = vpop.f32.mrf.mxu1 }
 0x2b8   : > { %v1215_v58 = vadd.f32 %v1211_v32, %v937_v52  ;;  %v279_v52 = vld [vmem:[%s3094_s1 + $0x18] sm:$0xff] }
 0x2ba   : > { %v1219_v59 = vpack.c.bf16 %v1215_v58, %v1215_v58 }
 0x2bc   : > { %1275 = vmatpush.bf16.xpose.msra.mxu1 %v1219_v59  ;;  %v951_v58 = vpop.f32.mrf.mxu2  ;;  %v1220_v59 = vperm.slane %v279_v52, 0 }
 0x2be   : > { %v1221_v11 = vadd.f32 %v1220_v59, %v949_v57 }
 0x314   : > { %v995_v3 = vpop.f32.mrf.mxu3 }
 0x315   : > { %v1038_v4 = vmul.f32 0.25, %v995_v3  ;;  %v1225_v3 = vpack.c.bf16 %v1221_v11, %v1221_v11 }
 0x317   : > { %v1054_v7 = vadd.f32 %v1046_v2, %v1038_v4 }
 0x319   : > { %v1059_v8 = vsel %vm1058_vm3, %v1054_v7, -inf }
 0x31a   : > { %1060 = vmax.xlane.f32.xlu0 %v1059_v8 }
 0x31c   : > { %v997_v10 = vpop.f32.mrf.mxu3 }
 0x31d   : > { %v1341_v10 = vsel %vm1110_vm2, %v1225_v3, 0 }
 0x31e   : > { %v1021_v14 = vpop.f32.mrf.mxu0 }
 0x31f   : > { %v1040_v15 = vmul.f32 0.25, %v1021_v14 }
 0x321   : > { %v1056_v12 = vadd.f32 %v3320_v13, %v1040_v15 }
 0x323   : > { %v1065_v20 = vsel %vm1058_vm3, %v1056_v12, -inf }
 0x324   : > { %v1008_v18 = vpop.f32.mrf.mxu3  ;;  %1066 = vmax.xlane.f32.xlu2 %v1065_v20 }
 0x325   : > { %v1039_v21 = vmul.f32 0.25, %v1008_v18 }
 0x326   : > { %v1023_v24 = vpop.f32.mrf.mxu0  ;;  %v1034_v25 = vpop.f32.mrf.mxu1 }
 0x327   : > { %v1041_v26 = vmul.f32 0.25, %v1034_v25  ;;  %v1055_v27 = vadd.f32 %v3326_v56, %v1039_v21  ;;  %v1222_v24 = vadd.f32 %v1220_v59, %v951_v58 }
 0x329   : > { %v1062_v28 = vsel %vm1058_vm3, %v1055_v27, -inf  ;;  %v1057_v29 = vadd.f32 %v3328_v22, %v1041_v26 }
 0x32a   : > { %1063 = vmax.xlane.f32.xlu1 %v1062_v28 }
 0x32b   : > { %v1068_v30 = vsel %vm1058_vm3, %v1057_v29, -inf }
 0x32c   : > { %v1010_v31 = vpop.f32.mrf.mxu3  ;;  %1069 = vmax.xlane.f32.xlu0 %v1068_v30  ;;  %v1226_v30 = vpack.c.bf16 %v1222_v24, %v1222_v24 }
 0x32e   : > { %v1036_v17 = vpop.f32.mrf.mxu1 }
 0x38d   : > { %v1061_v32 = vpop.xlane.xlu0 %1060 }
 0x38e   : > { %v1071_v33 = vsub.f32 %v1054_v7, %v1061_v32  ;;  %v954_v7 = vpop.f32.mrf.mxu2 }
 0x38f   : > { %v1223_v14 = vadd.f32 %v1220_v59, %v954_v7 }
 0x390   : > { %v1075_v34 = vmul.f32 1.442695, %v1071_v33 }
 0x391   : > { %v1227_v19 = vpack.c.bf16 %v1223_v14, %v1223_v14 }
 0x392   : > { %2678 = vpow2.f32 %v1075_v34 }
 0x396   : > { %v956_v21 = vpop.f32.mrf.mxu2 }
 0x397   : > { %v1067_v63 = vpop.xlane.xlu2 %1066  ;;  %v1224_v28 = vadd.f32 %v1220_v59, %v956_v21 }
 0x398   : > { %v2679_v51 = vpop.eup %2678  ;;  %v1073_v35 = vsub.f32 %v1056_v12, %v1067_v63  ;;  %v1202_v12 = vperm.slane %v3294_v39, 6  ;;  %v1360_v63 = vsel %vm1110_vm2, %v1226_v30, 0 }
 0x399   : > { %v1083_v36 = vsel %vm1058_vm3, %v2679_v51, 0.0  ;;  %v1228_v32 = vpack.c.bf16 %v1224_v28, %v1224_v28 }
 0x39a   : > { %v1079_v37 = vmul.f32 1.442695, %v1073_v35  ;;  %1084 = vadd.xlane.f32.xlu1 %v1083_v36  ;;  %v1203_v26 = vadd.f32 %v1202_v12, %v3304_v60  ;;  %v1205_v35 = vadd.f32 %v1202_v12, %v3309_v50 }
 0x39b   : > { %v1398_v60 = vsel %vm1110_vm2, %v1228_v32, 0 }
 0x39c   : > { %2680 = vpow2.f32 %v1079_v37  ;;  %v1207_v39 = vpack.c.bf16 %v1203_v26, %v1203_v26  ;;  %v1209_v36 = vpack.c.bf16 %v1205_v35, %v1205_v35  ;;  %v1204_v37 = vadd.f32 %v1202_v12, %v3306_v61  ;;  %v2569_v35 = vld [vmem:[%s3067_s6 + $0x254] sm:$0xf0] }
 0x39d   : > { %v1064_v38 = vpop.xlane.xlu1 %1063 }
 0x39e   : > { %v1072_v41 = vsub.f32 %v1055_v27, %v1064_v38  ;;  %v1379_v27 = vsel %vm1110_vm2, %v1227_v19, 0  ;;  %v1206_v38 = vadd.f32 %v1202_v12, %v3314_v5 }
 0x39f   : > { %v1070_v42 = vpop.xlane.xlu0 %1069 }
 0x3a0   : > { %v1077_v44 = vmul.f32 1.442695, %v1072_v41  ;;  %v1074_v45 = vsub.f32 %v1057_v29, %v1070_v42  ;;  %v1208_v41 = vpack.c.bf16 %v1204_v37, %v1204_v37  ;;  %v1210_v42 = vpack.c.bf16 %v1206_v38, %v1206_v38  ;;  %v2427_v37 = vld [vmem:[%s3067_s6 + $0x1d4] sm:$0xf]  ;;  %v2568_v38 = vld [vmem:[%s3067_s6 + $0x1fc] sm:$0xf0] }
 0x3a2   : > { %v2681_v46 = vpop.eup %2680  ;;  %2682 = vpow2.f32 %v1077_v44  ;;  %v1081_v47 = vmul.f32 1.442695, %v1074_v45 }
 0x3a3   : > { %v1089_v48 = vsel %vm1058_vm3, %v2681_v46, 0.0 }
 0x3a4   : > { %2684 = vpow2.f32 %v1081_v47  ;;  %1090 = vadd.xlane.f32.xlu0 %v1089_v48 }
 0x3a8   : > { %v2683_v49 = vpop.eup %2682 }
 0x3a9   : > { %v1086_v53 = vsel %vm1058_vm3, %v2683_v49, 0.0 }
 0x3aa   : > { %v2685_v54 = vpop.eup %2684  ;;  %1087 = vadd.xlane.f32.xlu2 %v1086_v53 }
 0x3ab   : > { %v1092_v55 = vsel %vm1058_vm3, %v2685_v54, 0.0 }
 0x3ac   : > { %1093 = vadd.xlane.f32.xlu1 %v1092_v55 }
 0x40d   : > { %v1085_v23 = vpop.xlane.xlu1 %1084 }
 0x40e   : > { %2686 = vrcp.f32 %v1085_v23 }
 0x414   : > { %v2687_v0 = vpop.eup %2686 }
 0x415   : > { %v1099_v4 = vmul.f32 %v2687_v0, %v2679_v51 }
 0x417   : > { %v1103_v8 = vpack.c.bf16 %v1099_v4, %v1099_v4  ;;  %v1091_v9 = vpop.xlane.xlu0 %1090 }
 0x418   : > { %2688 = vrcp.f32 %v1091_v9 }
 0x419   : > { %2365 = vmatmul.msk.bf16.vlgmr.msra.gmra.mxu2 %vm1058_vm3, %v1103_v8 }
 0x41a   : > { %1350 = vmatpush.bf16.msra.mxu2 %v1341_v10 }
 0x41d   : > { %v1088_v15 = vpop.xlane.xlu2 %1087 }
 0x41e   : > { %v2689_v16 = vpop.eup %2688  ;;  %2690 = vrcp.f32 %v1088_v15 }
 0x41f   : > { %v1101_v20 = vmul.f32 %v2689_v16, %v2681_v46  ;;  %v1094_v18 = vpop.xlane.xlu1 %1093 }
 0x420   : > { %2692 = vrcp.f32 %v1094_v18 }
 0x421   : > { %v1105_v25 = vpack.c.bf16 %v1101_v20, %v1101_v20 }
 0x423   : > { %2367 = vmatmul.msk.bf16.vlgmr.msrb.gmra.mxu0 %vm1058_vm3, %v1105_v25 }
 0x424   : > { %v2691_v29 = vpop.eup %2690  ;;  %1388 = vmatpush.bf16.msrb.mxu0 %v1379_v27 }
 0x425   : > { %v1100_v31 = vmul.f32 %v2691_v29, %v2683_v49 }
 0x426   : > { %v2693_v17 = vpop.eup %2692 }
 0x427   : > { %v1104_v33 = vpack.c.bf16 %v1100_v31, %v1100_v31  ;;  %v1102_v34 = vmul.f32 %v2693_v17, %v2685_v54 }
 0x429   : > { %v1106_v51 = vpack.c.bf16 %v1102_v34, %v1102_v34  ;;  %2366 = vmatmul.msk.bf16.vlgmr.msrb.gmra.mxu3 %vm1058_vm3, %v1104_v33  ;;  %1237 = vmatmul.bf16.vlgmr.msrb.gmra.mxu2 %v1207_v39  ;;  %v2435_v34 = vld [vmem:[%s3067_s6 + $0x284] sm:$0xf] }
 0x42a   : > { %1369 = vmatpush.bf16.msrb.mxu3 %v1360_v63  ;;  %v2570_v63 = vld [vmem:[%s3067_s6 + $0x2ac] sm:$0xf0] }
 0x42b   : > { %2368 = vmatmul.msk.bf16.vlgmr.msrb.gmra.mxu1 %vm1058_vm3, %v1106_v51  ;;  %v2436_v51 = vor.u32 %v2570_v63, %v2435_v34  ;;  %v2383_v63 = vld [vmem:[%s3067_s6 + $0xd0] sm:$0xf] }
 0x42c   : > { %1407 = vmatpush.bf16.msrb.mxu1 %v1398_v60  ;;  %v2431_v60 = vld [vmem:[%s3067_s6 + $0x22c] sm:$0xf] }
 0x433   : > { %1263 = vmatmul.bf16.vlgmr.msra.gmra.mxu0 %v1209_v36  ;;  %v2432_v36 = vor.u32 %v2569_v35, %v2431_v60  ;;  %v2379_v35 = vld [vmem:[%s3067_s6 + $0x78] sm:$0xf] }
 0x439   : > { %1250 = vmatmul.bf16.vlgmr.msra.gmra.mxu3 %v1208_v41  ;;  %v2428_v41 = vor.u32 %v2568_v38, %v2427_v37 }
 0x43a   : > { %1546 = vmatpush.bf16.msra.mxu3 %v2436_v51  ;;  %v2573_v51 = vld [vmem:[%s3067_s6 + $0xf8] sm:$0xf0] }
 0x43b   : > { %1276 = vmatmul.bf16.vlgmr.msra.gmra.mxu1 %v1210_v42  ;;  %v2423_v42 = vld [vmem:[%s3067_s6 + $0x17c] sm:$0xf]  ;;  %v2384_v60 = vor.u32 %v2573_v51, %v2383_v63 }
 0x43e   : > { %1547 = vmatpush.bf16.msra.mxu3 %v2432_v36 }
 0x442   : > { %1548 = vmatpush.bf16.msra.mxu3 %v2428_v41 }
 0x49c   : > { %v3352_v44 = vpop.f32.mrf.mxu2 }
 0x4a0   : > { %v3354_v45 = vpop.f32.mrf.mxu0 }
 0x4a4   : > { %v1125_v46 = vpop.f32.mrf.mxu2 }
 0x4a5   : > { %v2567_v46 = vld [vmem:[%s3067_s6 + $0x1a4] sm:$0xf0] }
 0x4a8   : > { %v1163_v47 = vpop.f32.mrf.mxu0  ;;  %v3356_v48 = vpop.f32.mrf.mxu1 }
 0x4a9   : > { %v1185_v50 = vpack.c.bf16 %v3356_v48, %v3354_v45  ;;  %v2424_v47 = vor.u32 %v2567_v46, %v2423_v42  ;;  %v2375_v45 = vld [vmem:[%s3067_s6 + $0x20] sm:$0xf]  ;;  %v2571_v48 = vld [vmem:[%s3067_s6 + $0x48] sm:$0xf0] }
 0x4ab   : > { %1549 = vmatpush.bf16.msra.mxu3 %v2424_v47 }
 0x4ac   : > { %v3360_v49 = vpop.f32.mrf.mxu3  ;;  %v1238_v61 = vpop.f32.mrf.mxu2 }
 0x4ad   : > { %v1184_v5 = vpack.c.bf16 %v3360_v49, %v3352_v44  ;;  %v1281_v53 = vmul.f32 0.25, %v1238_v61  ;;  %v2419_v61 = vld [vmem:[%s3067_s6 + $0x124] sm:$0xf] }
 0x4ae   : > { %v2572_v44 = vld [vmem:[%s3067_s6 + $0xa0] sm:$0xf0] }
 0x4af   : > { %v1285_v54 = vadd.f32 %v1281_v53, %v1046_v2  ;;  %v2566_v53 = vld [vmem:[%s3067_s6 + $0x14c] sm:$0xf0]  ;;  %v2380_v49 = vor.u32 %v2572_v44, %v2379_v35  ;;  %v2443_v44 = vld [vmem:[%s3067_s6 + $0x7c] sm:$0xf] }
 0x4b0   : > { %v1182_v55 = vpop.f32.mrf.mxu1  ;;  %v1264_v57 = vpop.f32.mrf.mxu0 }
 0x4b1   : > { %v1283_v52 = vmul.f32 0.25, %v1264_v57  ;;  %v1289_v58 = vsel %vm1058_vm3, %v1285_v54, -inf  ;;  %v2415_v55 = vld [vmem:[%s3067_s6 + $0xcc] sm:$0xf]  ;;  %v2565_v57 = vld [vmem:[%s3067_s6 + $0xf4] sm:$0xf0] }
 0x4b2   : > { %1290 = vmax.xlane.f32.xlu2 %v1289_v58  ;;  %v2411_v58 = vld [vmem:[%s3067_s6 + $0x74] sm:$0xf] }
 0x4b3   : > { %v1287_v59 = vadd.f32 %v1283_v52, %v3320_v13  ;;  %v2416_v52 = vor.u32 %v2565_v57, %v2415_v55  ;;  %v3420_v55 = vld [vmem:[%s3094_s1 + $0x8] sm:$0xff] }
 0x4b4   : > { %v1144_v23 = vpop.f32.mrf.mxu3  ;;  %v1240_v11 = vpop.f32.mrf.mxu2  ;;  %v1565_v57 = vperm.slane %v3420_v55, 4 }
 0x4b5   : > { %v1295_v0 = vsel %vm1058_vm3, %v1287_v59, -inf }
 0x4b6   : > { %1296 = vmax.xlane.f32.xlu1 %v1295_v0  ;;  %v2407_v0 = vld [vmem:[%s3067_s6 + $0x1c] sm:$0xf] }
 0x4b8   : > { %v1266_v3 = vpop.f32.mrf.mxu0  ;;  %v1277_v4 = vpop.f32.mrf.mxu1 }
 0x4b9   : > { %v1284_v7 = vmul.f32 0.25, %v1277_v4  ;;  %v2563_v3 = vld [vmem:[%s3067_s6 + $0x44] sm:$0xf0] }
 0x4bb   : > { %v1288_v8 = vadd.f32 %v1284_v7, %v3328_v22  ;;  %v2408_v7 = vor.u32 %v2563_v3, %v2407_v0 }
 0x4bc   : > { %v1251_v1 = vpop.f32.mrf.mxu3 }
 0x4bd   : > { %v1282_v2 = vmul.f32 0.25, %v1251_v1  ;;  %v1298_v9 = vsel %vm1058_vm3, %v1288_v8, -inf }
 0x4be   : > { %1299 = vmax.xlane.f32.xlu2 %v1298_v9 }
 0x4bf   : > { %v1286_v10 = vadd.f32 %v1282_v2, %v3326_v56 }
 0x4c0   : > { %v1279_v14 = vpop.f32.mrf.mxu1 }
 0x4c1   : > { %v1292_v13 = vsel %vm1058_vm3, %v1286_v10, -inf }
 0x4c2   : > { %1293 = vmax.xlane.f32.xlu0 %v1292_v13 }
 0x4c4   : > { %v1253_v15 = vpop.f32.mrf.mxu3 }
 0x525   : > { %v1291_v16 = vpop.xlane.xlu2 %1290 }
 0x526   : > { %v1301_v12 = vsub.f32 %v1285_v54, %v1291_v16  ;;  %v2420_v54 = vor.u32 %v2566_v53, %v2419_v61 }
 0x528   : > { %v1305_v19 = vmul.f32 1.442695, %v1301_v12  ;;  %1550 = vmatpush.bf16.msra.mxu3 %v2420_v54 }
 0x529   : > { %v1297_v20 = vpop.xlane.xlu1 %1296 }
 0x52a   : > { %2694 = vpow2.f32 %v1305_v19  ;;  %v1303_v18 = vsub.f32 %v1287_v59, %v1297_v20  ;;  %v2564_v59 = vld [vmem:[%s3067_s6 + $0x9c] sm:$0xf0] }
 0x52b   : > { %v2412_v11 = vor.u32 %v2564_v59, %v2411_v58 }
 0x52c   : > { %v1309_v21 = vmul.f32 1.442695, %v1303_v18  ;;  %1551 = vmatpush.bf16.msra.mxu3 %v2416_v52 }
 0x52e   : > { %2696 = vpow2.f32 %v1309_v21 }
 0x530   : > { %v2695_v22 = vpop.eup %2694  ;;  %1552 = vmatpush.bf16.msra.mxu3 %v2412_v11 }
 0x531   : > { %v1300_v24 = vpop.xlane.xlu2 %1299  ;;  %v1313_v25 = vsel %vm1058_vm3, %v2695_v22, 0.0 }
 0x532   : > { %v1304_v26 = vsub.f32 %v1288_v8, %v1300_v24  ;;  %1314 = vadd.xlane.f32.xlu0 %v1313_v25  ;;  %v2578_v24 = vld [vmem:[%s3067_s6 + $0x2b0] sm:$0xf0]  ;;  %v2399_v25 = vld [vmem:[%s3067_s6 + $0x230] sm:$0xf] }
 0x534   : > { %v2697_v56 = vpop.eup %2696  ;;  %v1311_v27 = vmul.f32 1.442695, %v1304_v26  ;;  %1553 = vmatpush.bf16.msra.mxu3 %v2408_v7 }
 0x535   : > { %v1294_v28 = vpop.xlane.xlu0 %1293  ;;  %v1319_v29 = vsel %vm1058_vm3, %v2697_v56, 0.0 }
 0x536   : > { %2698 = vpow2.f32 %v1311_v27  ;;  %v1302_v30 = vsub.f32 %v1286_v10, %v1294_v28  ;;  %1320 = vadd.xlane.f32.xlu2 %v1319_v29  ;;  %v2395_v28 = vld [vmem:[%s3067_s6 + $0x1d8] sm:$0xf]  ;;  %v2576_v29 = vld [vmem:[%s3067_s6 + $0x200] sm:$0xf0] }
 0x538   : > { %v1307_v31 = vmul.f32 1.442695, %v1302_v30  ;;  %v2396_v30 = vor.u32 %v2576_v29, %v2395_v28  ;;  %v2583_v28 = vld [vmem:[%s3067_s6 + $0x1ac] sm:$0xf0] }
 0x53a   : > { %2700 = vpow2.f32 %v1307_v31  ;;  %v2391_v31 = vld [vmem:[%s3067_s6 + $0x180] sm:$0xf] }
 0x53c   : > { %v2699_v17 = vpop.eup %2698 }
 0x53d   : > { %v1322_v39 = vsel %vm1058_vm3, %v2699_v17, 0.0 }
 0x53e   : > { %1323 = vadd.xlane.f32.xlu0 %v1322_v39 }
 0x540   : > { %v2701_v32 = vpop.eup %2700 }
 0x541   : > { %v1316_v33 = vsel %vm1058_vm3, %v2701_v32, 0.0 }
 0x542   : > { %1317 = vadd.xlane.f32.xlu1 %v1316_v33  ;;  %v2574_v33 = vld [vmem:[%s3067_s6 + $0x150] sm:$0xf0] }
 0x5a5   : > { %v1315_v23 = vpop.xlane.xlu0 %1314 }
 0x5a6   : > { %2702 = vrcp.f32 %v1315_v23 }
 0x5a9   : > { %v1321_v4 = vpop.xlane.xlu2 %1320 }
 0x5aa   : > { %2704 = vrcp.f32 %v1321_v4 }
 0x5ac   : > { %v2703_v8 = vpop.eup %2702 }
 0x5ad   : > { %v1329_v1 = vmul.f32 %v2703_v8, %v2695_v22  ;;  %v2403_v22 = vld [vmem:[%s3067_s6 + $0x288] sm:$0xf] }
 0x5ae   : > { %v2404_v26 = vor.u32 %v2578_v24, %v2403_v22  ;;  %v2463_v22 = vld [vmem:[%s3067_s6 + $0x234] sm:$0xf]  ;;  %v2585_v24 = vld [vmem:[%s3067_s6 + $0x25c] sm:$0xf0] }
 0x5af   : > { %v1333_v2 = vpack.c.bf16 %v1329_v1, %v1329_v1 }
 0x5b0   : > { %v2705_v9 = vpop.eup %2704  ;;  %1479 = vmatpush.bf16.msrb.mxu2 %v2404_v26  ;;  %v2584_v26 = vld [vmem:[%s3067_s6 + $0x204] sm:$0xf0] }
 0x5b1   : > { %v1331_v10 = vmul.f32 %v2705_v9, %v2697_v56  ;;  %2369 = vmatmul.msk.bf16.vlgmr.msra.gmra.mxu2 %vm1058_vm3, %v1333_v2  ;;  %v1324_v14 = vpop.xlane.xlu0 %1323  ;;  %v2577_v56 = vld [vmem:[%s3067_s6 + $0x258] sm:$0xf0] }
 0x5b2   : > { %2706 = vrcp.f32 %v1324_v14  ;;  %v2400_v27 = vor.u32 %v2577_v56, %v2399_v25  ;;  %v2464_v25 = vor.u32 %v2585_v24, %v2463_v22 }
 0x5b3   : > { %v1335_v13 = vpack.c.bf16 %v1331_v10, %v1331_v10 }
 0x5b4   : > { %1480 = vmatpush.bf16.msrb.mxu2 %v2400_v27  ;;  %v2455_v27 = vld [vmem:[%s3067_s6 + $0x184] sm:$0xf] }
 0x5b5   : > { %v1318_v15 = vpop.xlane.xlu1 %1317  ;;  %2371 = vmatmul.msk.bf16.vlgmr.msrb.gmra.mxu0 %vm1058_vm3, %v1335_v13  ;;  %v2456_v29 = vor.u32 %v2583_v28, %v2455_v27 }
 0x5b6   : > { %2708 = vrcp.f32 %v1318_v15 }
 0x5b8   : > { %v2707_v16 = vpop.eup %2706  ;;  %1481 = vmatpush.bf16.msrb.mxu2 %v2396_v30  ;;  %v2451_v30 = vld [vmem:[%s3067_s6 + $0x12c] sm:$0xf] }
 0x5b9   : > { %v1332_v12 = vmul.f32 %v2707_v16, %v2699_v17  ;;  %v2575_v17 = vld [vmem:[%s3067_s6 + $0x1a8] sm:$0xf0] }
 0x5ba   : > { %v2392_v39 = vor.u32 %v2575_v17, %v2391_v31  ;;  %v2582_v31 = vld [vmem:[%s3067_s6 + $0x154] sm:$0xf0] }
 0x5bb   : > { %v1336_v19 = vpack.c.bf16 %v1332_v12, %v1332_v12  ;;  %v2452_v17 = vor.u32 %v2582_v31, %v2451_v30  ;;  %v1666_v31 = vperm.slane %v3420_v55, 5 }
 0x5bc   : > { %v2709_v20 = vpop.eup %2708  ;;  %1482 = vmatpush.bf16.msrb.mxu2 %v2392_v39 }
 0x5bd   : > { %v1330_v18 = vmul.f32 %v2709_v20, %v2701_v32  ;;  %2372 = vmatmul.msk.bf16.vlgmr.msrb.gmra.mxu1 %vm1058_vm3, %v1336_v19  ;;  %v2387_v32 = vld [vmem:[%s3067_s6 + $0x128] sm:$0xf]  ;;  %v2467_v20 = vld [vmem:[%s3067_s6 + $0x28c] sm:$0xf] }
 0x5be   : > { %v2388_v34 = vor.u32 %v2574_v33, %v2387_v32  ;;  %v2447_v32 = vld [vmem:[%s3067_s6 + $0xd4] sm:$0xf]  ;;  %v2581_v33 = vld [vmem:[%s3067_s6 + $0xfc] sm:$0xf0] }
 0x5bf   : > { %v1334_v21 = vpack.c.bf16 %v1330_v18, %v1330_v18  ;;  %v2586_v18 = vld [vmem:[%s3067_s6 + $0x2b4] sm:$0xf0]  ;;  %v2448_v63 = vor.u32 %v2581_v33, %v2447_v32 }
 0x5c0   : > { %1483 = vmatpush.bf16.msrb.mxu2 %v2388_v34 }
 0x5c1   : > { %2370 = vmatmul.msk.bf16.vlgmr.msrb.gmra.mxu3 %vm1058_vm3, %v1334_v21  ;;  %v2468_v21 = vor.u32 %v2586_v18, %v2467_v20 }
 0x5c3   : > { %1743 = vmatpush.bf16.msra.mxu0 %v2468_v21 }
 0x5c4   : > { %1484 = vmatpush.bf16.msrb.mxu2 %v2384_v60 }
 0x5c7   : > { %1744 = vmatpush.bf16.msra.mxu0 %v2464_v25 }
 0x5c8   : > { %1485 = vmatpush.bf16.msrb.mxu2 %v2380_v49  ;;  %v2580_v49 = vld [vmem:[%s3067_s6 + $0xa4] sm:$0xf0] }
 0x5d1   : > { %1554 = vmatmul.bf16.vlgmr.msra.gmra.mxu3 %v1184_v5 }
 0x5e1   : > { %1559 = vmatmul.bf16.gmra.mxu3 %v1185_v50  ;;  %v2376_v50 = vor.u32 %v2571_v48, %v2375_v45  ;;  %v2444_v48 = vor.u32 %v2580_v49, %v2443_v44 }
 0x5e3   : > { %1486 = vmatpush.bf16.msrb.mxu2 %v2376_v50 }
 0x632   : > { %v1390_v5 = vpop.f32.mrf.mxu0 }
 0x634   : > { %v1352_v36 = vpop.f32.mrf.mxu2 }
 0x63a   : > { %v1392_v37 = vpop.f32.mrf.mxu0  ;;  %v1409_v38 = vpop.f32.mrf.mxu1 }
 0x63b   : > { %v1414_v53 = vpack.c.bf16 %v1409_v38, %v1390_v5  ;;  %v2579_v37 = vld [vmem:[%s3067_s6 + $0x4c] sm:$0xf0] }
 0x63c   : > { %v1354_v41 = vpop.f32.mrf.mxu2 }
 0x642   : > { %v1411_v42 = vpop.f32.mrf.mxu1 }
 0x644   : > { %v1371_v46 = vpop.f32.mrf.mxu3 }
 0x645   : > { %v1413_v47 = vpack.c.bf16 %v1371_v46, %v1352_v36  ;;  %v2439_v36 = vld [vmem:[%s3067_s6 + $0x24] sm:$0xf] }
 0x646   : > { %v2440_v42 = vor.u32 %v2579_v37, %v2439_v36 }
 0x647   : > { %1487 = vmatmul.bf16.vlgmr.msrb.gmra.mxu2 %v1413_v47 }
 0x64c   : > { %v1373_v61 = vpop.f32.mrf.mxu3 }
 0x654   : > { %v1555_v54 = vpop.f32.mrf.mxu3 }
 0x657   : > { %1492 = vmatmul.bf16.gmra.mxu2 %v1414_v53 }
 0x65c   : > { %v1557_v23 = vpop.f32.mrf.mxu3 }
 0x664   : > { %v1560_v1 = vpop.f32.mrf.mxu3 }
 0x66c   : > { %v1562_v13 = vpop.f32.mrf.mxu3 }
 0x6ca   : > { %v1488_v52 = vpop.f32.mrf.mxu2 }
 0x6cb   : > { %v1556_v58 = vadd.f32 %v1555_v54, %v1488_v52 }
 0x6cd   : > { %v1566_v59 = vadd.f32 %v1565_v57, %v1556_v58 }
 0x6cf   : > { %v3424_v11 = vadd.f32 %v1566_v59, %v3274_v40 }
 0x6d1   : > { %1574 = vadd.xlane.f32.xlu1 %v3424_v11  ;;  %v1582_v0 = vmul.f32 %v3424_v11, %v3424_v11 }
 0x6d2   : > { %v1490_v3 = vpop.f32.mrf.mxu2 }
 0x6d3   : > { %v1558_v4 = vadd.f32 %v1557_v23, %v1490_v3  ;;  %1586 = vadd.xlane.f32.xlu0 %v1582_v0 }
 0x6d5   : > { %v1567_v7 = vadd.f32 %v1565_v57, %v1558_v4 }
 0x6d7   : > { %v3430_v8 = vadd.f32 %v1567_v7, %v3276_v43 }
 0x6d9   : > { %1576 = vadd.xlane.f32.xlu2 %v3430_v8  ;;  %v1583_v2 = vmul.f32 %v3430_v8, %v3430_v8 }
 0x6da   : > { %v1493_v40 = vpop.f32.mrf.mxu2 }
 0x6db   : > { %v1561_v9 = vadd.f32 %v1560_v1, %v1493_v40  ;;  %1588 = vadd.xlane.f32.xlu1 %v1583_v2 }
 0x6dd   : > { %v1568_v10 = vadd.f32 %v1565_v57, %v1561_v9 }
 0x6df   : > { %v3436_v14 = vadd.f32 %v1568_v10, %v3287_v62 }
 0x6e1   : > { %1578 = vadd.xlane.f32.xlu2 %v3436_v14  ;;  %v1584_v43 = vmul.f32 %v3436_v14, %v3436_v14 }
 0x6e2   : > { %v1495_v15 = vpop.f32.mrf.mxu2 }
 0x6e3   : > { %v1563_v16 = vadd.f32 %v1562_v13, %v1495_v15  ;;  %1590 = vadd.xlane.f32.xlu1 %v1584_v43 }
 0x6e5   : > { %v1569_v12 = vadd.f32 %v1565_v57, %v1563_v16 }
 0x6e7   : > { %v3442_v19 = vadd.f32 %v1569_v12, %v3289_v6  ;;  %v2459_v6 = vld [vmem:[%s3067_s6 + $0x1dc] sm:$0xf] }
 0x6e8   : > { %v2460_v56 = vor.u32 %v2584_v26, %v2459_v6 }
 0x6e9   : > { %1580 = vadd.xlane.f32.xlu0 %v3442_v19  ;;  %v1585_v62 = vmul.f32 %v3442_v19, %v3442_v19 }
 0x6ea   : > { %1745 = vmatpush.bf16.msra.mxu0 %v2460_v56 }
 0x6eb   : > { %1592 = vadd.xlane.f32.xlu2 %v1585_v62 }
 0x6ee   : > { %1746 = vmatpush.bf16.msra.mxu0 %v2456_v29 }
 0x6f2   : > { %1747 = vmatpush.bf16.msra.mxu0 %v2452_v17 }
 0x6f6   : > { %1748 = vmatpush.bf16.msra.mxu0 %v2448_v63 }
 0x6fa   : > { %1749 = vmatpush.bf16.msra.mxu0 %v2444_v48 }
 0x6fe   : > { %1750 = vmatpush.bf16.msra.mxu0 %v2440_v42 }
 0x744   : > { %v1575_v39 = vpop.xlane.xlu1 %1574 }
 0x745   : > { %v1594_v34 = vmul.f32 0.03125, %v1575_v39 }
 0x746   : > { %v1587_v51 = vpop.xlane.xlu0 %1586 }
 0x747   : > { %v1602_v60 = vmul.f32 %v1594_v34, %v1594_v34  ;;  %v1598_v35 = vmul.f32 0.03125, %v1587_v51  ;;  %v1614_v6 = vsub.f32 %v3424_v11, %v1594_v34  ;;  %v1671_v34 = vperm.slane %v3420_v55, 6 }
 0x749   : > { %v1606_v45 = vsub.f32 %v1598_v35, %v1602_v60 }
 0x74b   : > { %v1610_v50 = vmax.f32 %v1606_v45, 0.0 }
 0x74c   : > { %v1577_v5 = vpop.xlane.xlu2 %1576 }
 0x74d   : > { %v1618_v38 = vadd.f32 1e-12, %v1610_v50  ;;  %v1595_v41 = vmul.f32 0.03125, %v1577_v5 }
 0x74e   : > { %v1589_v46 = vpop.xlane.xlu1 %1588 }
 0x74f   : > { %2710 = vrsqrt.f32 %v1618_v38  ;;  %v1603_v47 = vmul.f32 %v1595_v41, %v1595_v41  ;;  %v1599_v61 = vmul.f32 0.03125, %v1589_v46  ;;  %vm1628_vm5 = vweird.f32 %v1618_v38 }
 0x750   : > { %v1615_v39 = vsub.f32 %v3430_v8, %v1595_v41 }
 0x751   : > { %v1607_v53 = vsub.f32 %v1599_v61, %v1603_v47 }
 0x753   : > { %v1611_v54 = vmax.f32 %v1607_v53, 0.0 }
 0x754   : > { %v1579_v57 = vpop.xlane.xlu2 %1578 }
 0x755   : > { %v2711_v52 = vpop.eup %2710  ;;  %v3463_v58 = vmul.f32 0.03125, %v1579_v57  ;;  %v1619_v23 = vadd.f32 1e-12, %v1611_v54 }
 0x756   : > { %v1623_v59 = vmul.f32 %v2711_v52, %v1618_v38  ;;  %v1591_v0 = vpop.xlane.xlu1 %1590  ;;  %vm1629_vm4 = vweird.f32 %v2711_v52 }
 0x757   : > { %v1604_v3 = vmul.f32 %v3463_v58, %v3463_v58  ;;  %v1600_v4 = vmul.f32 0.03125, %v1591_v0  ;;  %2712 = vrsqrt.f32 %v1619_v23  ;;  %vm1630_vm6 = vmor %vm1628_vm5, %vm1629_vm4  ;;  %vm1638_vm8 = vweird.f32 %v1619_v23  ;;  %v2495_v0 = vld [vmem:[%s3067_s6 + $0x238] sm:$0xf] }
 0x758   : > { %v1624_v7 = vmul.f32 %v2711_v52, %v1623_v59  ;;  %v1616_v38 = vsub.f32 %v3436_v14, %v3463_v58  ;;  %v2499_v59 = vld [vmem:[%s3067_s6 + $0x290] sm:$0xf] }
 0x759   : > { %v1608_v1 = vsub.f32 %v1600_v4, %v1604_v3  ;;  %v2593_v3 = vld [vmem:[%s3067_s6 + $0x260] sm:$0xf0] }
 0x75a   : > { %v1625_v2 = vmul.f32 0.5, %v1624_v7  ;;  %v2496_v4 = vor.u32 %v2593_v3, %v2495_v0  ;;  %v2491_v7 = vld [vmem:[%s3067_s6 + $0x1e0] sm:$0xf] }
 0x75b   : > { %v1612_v40 = vmax.f32 %v1608_v1, 0.0  ;;  %v2592_v1 = vld [vmem:[%s3067_s6 + $0x208] sm:$0xf0] }
 0x75c   : > { %v1626_v9 = vsub.f32 1.5, %v1625_v2  ;;  %v1581_v10 = vpop.xlane.xlu0 %1580  ;;  %v2492_v2 = vor.u32 %v2592_v1, %v2491_v7 }
 0x75d   : > { %v1620_v43 = vadd.f32 1e-12, %v1612_v40  ;;  %v1597_v13 = vmul.f32 0.03125, %v1581_v10  ;;  %v2713_v15 = vpop.eup %2712  ;;  %v2487_v40 = vld [vmem:[%s3067_s6 + $0x188] sm:$0xf] }
 0x75e   : > { %v1593_v16 = vpop.xlane.xlu2 %1592  ;;  %v1627_v12 = vmul.f32 %v2711_v52, %v1626_v9  ;;  %v1633_v62 = vmul.f32 %v2713_v15, %v1619_v23  ;;  %vm1639_vm7 = vweird.f32 %v2713_v15  ;;  %v2591_v9 = vld [vmem:[%s3067_s6 + $0x1b0] sm:$0xf0] }
 0x75f   : > { %2714 = vrsqrt.f32 %v1620_v43  ;;  %v1605_v20 = vmul.f32 %v1597_v13, %v1597_v13  ;;  %v1601_v18 = vmul.f32 0.03125, %v1593_v16  ;;  %vm1640_vm9 = vmor %vm1638_vm8, %vm1639_vm7  ;;  %vm1648_vm11 = vweird.f32 %v1620_v43  ;;  %v2479_v16 = vld [vmem:[%s3067_s6 + $0xd8] sm:$0xf] }
 0x760   : > { %v1634_v21 = vmul.f32 %v2713_v15, %v1633_v62  ;;  %v1631_v24 = vsel %vm1630_vm6, %v2711_v52, %v1627_v12  ;;  %v1617_v47 = vsub.f32 %v3442_v19, %v1597_v13  ;;  %v2594_v19 = vld [vmem:[%s3067_s6 + $0x2b8] sm:$0xf0]  ;;  %v2488_v10 = vor.u32 %v2591_v9, %v2487_v40  ;;  %v2589_v12 = vld [vmem:[%s3067_s6 + $0x100] sm:$0xf0] }
 0x761   : > { %v1609_v22 = vsub.f32 %v1601_v18, %v1605_v20  ;;  %v1662_v28 = vmul.f32 %v1631_v24, %v1614_v6  ;;  %v2500_v23 = vor.u32 %v2594_v19, %v2499_v59  ;;  %v2590_v13 = vld [vmem:[%s3067_s6 + $0x158] sm:$0xf0]  ;;  %v2480_v62 = vor.u32 %v2589_v12, %v2479_v16  ;;  %v2475_v20 = vld [vmem:[%s3067_s6 + $0x80] sm:$0xf]  ;;  %v2588_v18 = vld [vmem:[%s3067_s6 + $0xa8] sm:$0xf0] }
 0x762   : > { %v1635_v25 = vmul.f32 0.5, %v1634_v21  ;;  %v2476_v21 = vor.u32 %v2588_v18, %v2475_v20  ;;  %v2471_v24 = vld [vmem:[%s3067_s6 + $0x28] sm:$0xf] }
 0x763   : > { %v1613_v26 = vmax.f32 %v1609_v22, 0.0  ;;  %v1667_v11 = vmul.f32 %v1666_v31, %v1662_v28  ;;  %1865 = vmatpush.bf16.msra.mxu1 %v2500_v23  ;;  %v1694_v22 = vperm.slane %v3420_v55, 7 }
 0x764   : > { %v1636_v27 = vsub.f32 1.5, %v1635_v25  ;;  %v2587_v25 = vld [vmem:[%s3067_s6 + $0x50] sm:$0xf0] }
 0x765   : > { %v2715_v56 = vpop.eup %2714  ;;  %v1621_v30 = vadd.f32 1e-12, %v1613_v26  ;;  %v3471_v49 = vadd.f32 %v1671_v34, %v1667_v11  ;;  %v2472_v6 = vor.u32 %v2587_v25, %v2471_v24 }
 0x766   : > { %v1643_v29 = vmul.f32 %v2715_v56, %v1620_v43  ;;  %v1637_v17 = vmul.f32 %v2713_v15, %v1636_v27  ;;  %vm1649_vm10 = vweird.f32 %v2715_v56  ;;  %v2483_v43 = vld [vmem:[%s3067_s6 + $0x130] sm:$0xf] }
 0x767   : > { %2716 = vrsqrt.f32 %v1621_v30  ;;  %vm1650_vm12 = vmor %vm1648_vm11, %vm1649_vm10  ;;  %vm1658_vm14 = vweird.f32 %v1621_v30  ;;  %1866 = vmatpush.bf16.msra.mxu1 %v2496_v4 }
 0x768   : > { %v1644_v32 = vmul.f32 %v2715_v56, %v1643_v29  ;;  %v1641_v33 = vsel %vm1640_vm9, %v2713_v15, %v1637_v17  ;;  %v2484_v15 = vor.u32 %v2590_v13, %v2483_v43 }
 0x769   : > { %v1663_v63 = vmul.f32 %v1641_v33, %v1615_v39 }
 0x76a   : > { %v1645_v51 = vmul.f32 0.5, %v1644_v32 }
 0x76b   : > { %v1668_v35 = vmul.f32 %v1666_v31, %v1663_v63  ;;  %1867 = vmatpush.bf16.msra.mxu1 %v2492_v2 }
 0x76c   : > { %v1646_v60 = vsub.f32 1.5, %v1645_v51 }
 0x76d   : > { %v2717_v44 = vpop.eup %2716  ;;  %v3473_v45 = vadd.f32 %v1671_v34, %v1668_v35 }
 0x76e   : > { %v1653_v48 = vmul.f32 %v2717_v44, %v1621_v30  ;;  %v1647_v50 = vmul.f32 %v2715_v56, %v1646_v60  ;;  %vm1659_vm13 = vweird.f32 %v2717_v44 }
 0x76f   : > { %v1676_v8 = vpack.c.bf16 %v3473_v45, %v3471_v49  ;;  %vm1660_vm15 = vmor %vm1658_vm14, %vm1659_vm13  ;;  %1868 = vmatpush.bf16.msra.mxu1 %v2488_v10  ;;  %v2735_v10 = vld [vmem:[%s3094_s1 + $0x10] sm:$0xff] }
 0x770   : > { %v1654_v5 = vmul.f32 %v2717_v44, %v1653_v48  ;;  %v1651_v37 = vsel %vm1650_vm12, %v2715_v56, %v1647_v50  ;;  %v1816_v43 = vperm.slane %v2735_v10, 0 }
 0x771   : > { %1751 = vmatmul.bf16.vlgmr.msra.gmra.mxu0 %v1676_v8  ;;  %v1664_v42 = vmul.f32 %v1651_v37, %v1616_v38 }
 0x772   : > { %v1655_v36 = vmul.f32 0.5, %v1654_v5 }
 0x773   : > { %v1669_v54 = vmul.f32 %v1666_v31, %v1664_v42  ;;  %1869 = vmatpush.bf16.msra.mxu1 %v2484_v15 }
 0x774   : > { %v1656_v41 = vsub.f32 1.5, %v1655_v36 }
 0x775   : > { %v3480_v52 = vadd.f32 %v1671_v34, %v1669_v54 }
 0x776   : > { %v1657_v46 = vmul.f32 %v2717_v44, %v1656_v41 }
 0x777   : > { %1870 = vmatpush.bf16.msra.mxu1 %v2480_v62 }
 0x778   : > { %v1661_v61 = vsel %vm1660_vm15, %v2717_v44, %v1657_v46 }
 0x779   : > { %v1665_v53 = vmul.f32 %v1661_v61, %v1617_v47 }
 0x77b   : > { %v1670_v57 = vmul.f32 %v1666_v31, %v1665_v53  ;;  %1871 = vmatpush.bf16.msra.mxu1 %v2476_v21 }
 0x77d   : > { %v3482_v14 = vadd.f32 %v1671_v34, %v1670_v57 }
 0x77f   : > { %v1677_v58 = vpack.c.bf16 %v3482_v14, %v3480_v52  ;;  %1872 = vmatpush.bf16.msra.mxu1 %v2472_v6 }
 0x781   : > { %1756 = vmatmul.bf16.gmra.mxu0 %v1677_v58 }
 0x7ee   : > { %v1752_v26 = vpop.f32.mrf.mxu0 }
 0x7ef   : > { %v1753_v56 = vadd.f32 %v1752_v26, %v1694_v22 }
 0x7f1   : > { %v1762_v27 = vmul.f32 %v1753_v56, %v1753_v56 }
 0x7f3   : > { %v1766_v28 = vmul.f32 %v1762_v27, %v1753_v56 }
 0x7f5   : > { %v1770_v29 = vmul.f32 0.044715, %v1766_v28 }
 0x7f6   : > { %v1754_v30 = vpop.f32.mrf.mxu0 }
 0x7f7   : > { %v1774_v31 = vadd.f32 %v1770_v29, %v1753_v56  ;;  %v1755_v17 = vadd.f32 %v1754_v30, %v1694_v22 }
 0x7f9   : > { %v1778_v39 = vmul.f32 0.7978846, %v1774_v31  ;;  %v1763_v32 = vmul.f32 %v1755_v17, %v1755_v17 }
 0x7fb   : > { %v1767_v33 = vmul.f32 %v1763_v32, %v1755_v17  ;;  %2718 = vtanh.f32 %v1778_v39 }
 0x7fd   : > { %v1771_v63 = vmul.f32 0.044715, %v1767_v33 }
 0x7fe   : > { %v1757_v51 = vpop.f32.mrf.mxu0 }
 0x7ff   : > { %v1775_v55 = vadd.f32 %v1771_v63, %v1755_v17  ;;  %v1758_v11 = vadd.f32 %v1757_v51, %v1694_v22 }
 0x801   : > { %v1779_v34 = vmul.f32 0.7978846, %v1775_v55  ;;  %v1764_v60 = vmul.f32 %v1758_v11, %v1758_v11  ;;  %v2719_v35 = vpop.eup %2718 }
 0x802   : > { %v1786_v50 = vadd.f32 1.0, %v2719_v35 }
 0x803   : > { %2720 = vtanh.f32 %v1779_v34  ;;  %v1768_v44 = vmul.f32 %v1764_v60, %v1758_v11 }
 0x804   : > { %v1790_v42 = vmul.f32 0.5, %v1786_v50 }
 0x805   : > { %v1772_v48 = vmul.f32 0.044715, %v1768_v44 }
 0x806   : > { %v1759_v8 = vpop.f32.mrf.mxu0  ;;  %v1794_v54 = vmul.f32 %v1790_v42, %v1753_v56 }
 0x807   : > { %v1776_v5 = vadd.f32 %v1772_v48, %v1758_v11  ;;  %v1760_v36 = vadd.f32 %v1759_v8, %v1694_v22  ;;  %v3523_v8 = vperm.slane %v2735_v10, 1 }
 0x809   : > { %v2721_v37 = vpop.eup %2720  ;;  %v1765_v38 = vmul.f32 %v1760_v36, %v1760_v36  ;;  %v1780_v41 = vmul.f32 0.7978846, %v1776_v5 }
 0x80a   : > { %v1787_v46 = vadd.f32 1.0, %v2721_v37 }
 0x80b   : > { %v1769_v47 = vmul.f32 %v1765_v38, %v1760_v36  ;;  %2722 = vtanh.f32 %v1780_v41 }
 0x80c   : > { %v1791_v61 = vmul.f32 0.5, %v1787_v46 }
 0x80d   : > { %v1773_v53 = vmul.f32 0.044715, %v1769_v47  ;;  %v3525_v47 = vperm.slane %v2735_v10, 2 }
 0x80e   : > { %v1795_v57 = vmul.f32 %v1791_v61, %v1755_v17 }
 0x80f   : > { %v1777_v58 = vadd.f32 %v1773_v53, %v1760_v36 }
 0x810   : > { %v1798_v59 = vpack.c.bf16 %v1795_v57, %v1794_v54 }
 0x811   : > { %v1781_v19 = vmul.f32 0.7978846, %v1777_v58  ;;  %v2723_v23 = vpop.eup %2722 }
 0x812   : > { %1873 = vmatmul.bf16.vlgmr.msra.gmra.mxu1 %v1798_v59  ;;  %v1788_v0 = vadd.f32 1.0, %v2723_v23 }
 0x813   : > { %2724 = vtanh.f32 %v1781_v19 }
 0x814   : > { %v1792_v7 = vmul.f32 0.5, %v1788_v0 }
 0x816   : > { %v1796_v2 = vmul.f32 %v1792_v7, %v1758_v11 }
 0x819   : > { %v2725_v3 = vpop.eup %2724 }
 0x81a   : > { %v1789_v4 = vadd.f32 1.0, %v2725_v3 }
 0x81c   : > { %v1793_v1 = vmul.f32 0.5, %v1789_v4 }
 0x81e   : > { %v1797_v40 = vmul.f32 %v1793_v1, %v1760_v36 }
 0x820   : > { %v1799_v9 = vpack.c.bf16 %v1797_v40, %v1796_v2 }
 0x822   : > { %1878 = vmatmul.bf16.gmra.mxu1 %v1799_v9 }
 0x88f   : > { %v1874_v13 = vpop.f32.mrf.mxu1 }
 0x890   : > { %v1875_v15 = vadd.f32 %v1874_v13, %v1816_v43 }
 0x892   : > { %v1884_v16 = vadd.f32 %v1875_v15, %v3471_v49 }
 0x894   : > { %1888 = vadd.xlane.f32.xlu0 %v1884_v16  ;;  %v1896_v12 = vmul.f32 %v1884_v16, %v1884_v16 }
 0x896   : > { %1900 = vadd.xlane.f32.xlu1 %v1896_v12 }
 0x897   : > { %v1876_v62 = vpop.f32.mrf.mxu1 }
 0x898   : > { %v1877_v20 = vadd.f32 %v1876_v62, %v1816_v43 }
 0x89a   : > { %v3506_v18 = vadd.f32 %v1877_v20, %v3473_v45 }
 0x89c   : > { %v1897_v26 = vmul.f32 %v3506_v18, %v3506_v18 }
 0x89e   : > { %1890 = vadd.xlane.f32.xlu1 %v3506_v18 }
 0x89f   : > { %v1879_v21 = vpop.f32.mrf.mxu1 }
 0x8a0   : > { %v1880_v22 = vadd.f32 %v1879_v21, %v1816_v43 }
 0x8a2   : > { %v3510_v24 = vadd.f32 %v1880_v22, %v3480_v52 }
 0x8a4   : > { %1892 = vadd.xlane.f32.xlu2 %v3510_v24  ;;  %v1898_v52 = vmul.f32 %v3510_v24, %v3510_v24 }
 0x8a7   : > { %v1881_v25 = vpop.f32.mrf.mxu1 }
 0x8a8   : > { %v1882_v6 = vadd.f32 %v1881_v25, %v1816_v43 }
 0x8aa   : > { %v3514_v49 = vadd.f32 %v1882_v6, %v3482_v14 }
 0x8ac   : > { %1902 = vadd.xlane.f32.xlu2 %v1897_v26  ;;  %1894 = vadd.xlane.f32.xlu0 %v3514_v49  ;;  %v1899_v45 = vmul.f32 %v3514_v49, %v3514_v49 }
 0x8ae   : > { %1906 = vadd.xlane.f32.xlu1 %v1899_v45 }
 0x8b4   : > { %1904 = vadd.xlane.f32.xlu0 %v1898_v52 }
 0x907   : > { %v1889_v56 = vpop.xlane.xlu0 %1888 }
 0x908   : > { %v1908_v27 = vmul.f32 0.03125, %v1889_v56 }
 0x909   : > { %v1901_v28 = vpop.xlane.xlu1 %1900 }
 0x90a   : > { %v1916_v29 = vmul.f32 %v1908_v27, %v1908_v27  ;;  %v1912_v14 = vmul.f32 0.03125, %v1901_v28  ;;  %v1928_v37 = vsub.f32 %v1884_v16, %v1908_v27 }
 0x90c   : > { %v1920_v30 = vsub.f32 %v1912_v14, %v1916_v29 }
 0x90e   : > { %v1924_v31 = vmax.f32 %v1920_v30, 0.0 }
 0x910   : > { %v1932_v17 = vadd.f32 1e-12, %v1924_v31 }
 0x911   : > { %v1891_v63 = vpop.xlane.xlu1 %1890 }
 0x912   : > { %2726 = vrsqrt.f32 %v1932_v17  ;;  %v1909_v55 = vmul.f32 0.03125, %v1891_v63  ;;  %vm1942_vm1 = vweird.f32 %v1932_v17 }
 0x914   : > { %v1917_v44 = vmul.f32 %v1909_v55, %v1909_v55  ;;  %v1929_v6 = vsub.f32 %v3506_v18, %v1909_v55 }
 0x917   : > { %v1893_v39 = vpop.xlane.xlu2 %1892 }
 0x918   : > { %v2727_v32 = vpop.eup %2726  ;;  %v1910_v57 = vmul.f32 0.03125, %v1893_v39 }
 0x919   : > { %v1937_v33 = vmul.f32 %v2727_v32, %v1932_v17  ;;  %vm1943_vm0 = vweird.f32 %v2727_v32 }
 0x91a   : > { %vm1944_vm2 = vmor %vm1942_vm1, %vm1943_vm0  ;;  %v1918_v4 = vmul.f32 %v1910_v57, %v1910_v57 }
 0x91b   : > { %v1938_v51 = vmul.f32 %v2727_v32, %v1937_v33  ;;  %v1930_v33 = vsub.f32 %v3510_v24, %v1910_v57 }
 0x91d   : > { %v1939_v11 = vmul.f32 0.5, %v1938_v51 }
 0x91f   : > { %v1940_v34 = vsub.f32 1.5, %v1939_v11  ;;  %v1903_v60 = vpop.xlane.xlu2 %1902  ;;  %v1895_v35 = vpop.xlane.xlu0 %1894 }
 0x920   : > { %v1913_v48 = vmul.f32 0.03125, %v1903_v60  ;;  %v1911_v50 = vmul.f32 0.03125, %v1895_v35 }
 0x921   : > { %v1941_v5 = vmul.f32 %v2727_v32, %v1940_v34  ;;  %v1907_v36 = vpop.xlane.xlu1 %1906 }
 0x922   : > { %v1921_v38 = vsub.f32 %v1913_v48, %v1917_v44  ;;  %v1919_v41 = vmul.f32 %v1911_v50, %v1911_v50  ;;  %v1915_v42 = vmul.f32 0.03125, %v1907_v36  ;;  %v1931_v27 = vsub.f32 %v3514_v49, %v1911_v50 }
 0x923   : > { %v1945_v46 = vsel %vm1944_vm2, %v2727_v32, %v1941_v5 }
 0x924   : > { %v1976_v61 = vmul.f32 %v1945_v46, %v1928_v37  ;;  %v1925_v53 = vmax.f32 %v1921_v38, 0.0  ;;  %v1923_v54 = vsub.f32 %v1915_v42, %v1919_v41 }
 0x926   : > { %v1981_v58 = vmul.f32 %v3523_v8, %v1976_v61  ;;  %v1933_v59 = vadd.f32 1e-12, %v1925_v53  ;;  %v1927_v19 = vmax.f32 %v1923_v54, 0.0 }
 0x927   : > { %v1905_v23 = vpop.xlane.xlu0 %1904 }
 0x928   : > { %v1986_v0 = vadd.f32 %v3525_v47, %v1981_v58  ;;  %2728 = vrsqrt.f32 %v1933_v59  ;;  %v1935_v3 = vadd.f32 1e-12, %v1927_v19  ;;  %v1914_v7 = vmul.f32 0.03125, %v1905_v23 }
 0x929   : > { %vm1952_vm4 = vweird.f32 %v1933_v59 }
 0x92a   : > { %1990 = vst [vmem:[%s3531_s30] sm:$0xff] %v1986_v0  ;;  %2730 = vrsqrt.f32 %v1935_v3  ;;  %v1922_v1 = vsub.f32 %v1914_v7, %v1918_v4  ;;  %vm1972_vm7 = vweird.f32 %v1935_v3 }
 0x92c   : > { %v1926_v2 = vmax.f32 %v1922_v1, 0.0 }
 0x92e   : > { %v2729_v40 = vpop.eup %2728  ;;  %v1934_v10 = vadd.f32 1e-12, %v1926_v2 }
 0x92f   : > { %v1947_v9 = vmul.f32 %v2729_v40, %v1933_v59  ;;  %vm1953_vm3 = vweird.f32 %v2729_v40 }
 0x930   : > { %v2731_v43 = vpop.eup %2730  ;;  %2732 = vrsqrt.f32 %v1934_v10  ;;  %vm1954_vm6 = vmor %vm1952_vm4, %vm1953_vm3  ;;  %vm1962_vm10 = vweird.f32 %v1934_v10 }
 0x931   : > { %v1948_v13 = vmul.f32 %v2729_v40, %v1947_v9  ;;  %v1967_v15 = vmul.f32 %v2731_v43, %v1935_v3  ;;  %vm1973_vm5 = vweird.f32 %v2731_v43 }
 0x932   : > { %vm1974_vm8 = vmor %vm1972_vm7, %vm1973_vm5 }
 0x933   : > { %v1949_v16 = vmul.f32 0.5, %v1948_v13  ;;  %v1968_v12 = vmul.f32 %v2731_v43, %v1967_v15 }
 0x935   : > { %v1950_v62 = vsub.f32 1.5, %v1949_v16  ;;  %v1969_v20 = vmul.f32 0.5, %v1968_v12 }
 0x936   : > { %v2733_v21 = vpop.eup %2732 }
 0x937   : > { %v1951_v22 = vmul.f32 %v2729_v40, %v1950_v62  ;;  %v1970_v25 = vsub.f32 1.5, %v1969_v20  ;;  %v1957_v26 = vmul.f32 %v2733_v21, %v1934_v10  ;;  %vm1963_vm9 = vweird.f32 %v2733_v21 }
 0x938   : > { %vm1964_vm11 = vmor %vm1962_vm10, %vm1963_vm9 }
 0x939   : > { %v1955_v45 = vsel %vm1954_vm6, %v2729_v40, %v1951_v22  ;;  %v1971_v52 = vmul.f32 %v2731_v43, %v1970_v25  ;;  %v1958_v28 = vmul.f32 %v2733_v21, %v1957_v26 }
 0x93a   : > { %v1977_v56 = vmul.f32 %v1955_v45, %v1929_v6 }
 0x93b   : > { %v1975_v29 = vsel %vm1974_vm8, %v2731_v43, %v1971_v52  ;;  %v1959_v31 = vmul.f32 0.5, %v1958_v28 }
 0x93c   : > { %v1982_v14 = vmul.f32 %v3523_v8, %v1977_v56  ;;  %v1979_v30 = vmul.f32 %v1975_v29, %v1931_v27 }
 0x93d   : > { %v1960_v39 = vsub.f32 1.5, %v1959_v31 }
 0x93e   : > { %v1987_v18 = vadd.f32 %v3525_v47, %v1982_v14  ;;  %v1984_v17 = vmul.f32 %v3523_v8, %v1979_v30 }
 0x93f   : > { %v1961_v32 = vmul.f32 %v2733_v21, %v1960_v39 }
 0x940   : > { %1991 = vst [vmem:[%s3531_s30 + $0x8] sm:$0xff] %v1987_v18  ;;  %v1989_v49 = vadd.f32 %v3525_v47, %v1984_v17 }
 0x941   : > { %v1965_v63 = vsel %vm1964_vm11, %v2733_v21, %v1961_v32 }
 0x942   : > { %1993 = vst [vmem:[%s3531_s30 + $0x18] sm:$0xff] %v1989_v49  ;;  %v1978_v51 = vmul.f32 %v1965_v63, %v1930_v33 }
 0x944   : > { %v1983_v55 = vmul.f32 %v3523_v8, %v1978_v51 }
 0x946   : > { %v1988_v11 = vadd.f32 %v3525_v47, %v1983_v55 }
 0x948   : > { %1992 = vst [vmem:[%s3531_s30 + $0x10] sm:$0xff] %v1988_v11 }
 0x949   : > { %2853 = shalt.err (!%p2850_p5)
}
 0x94a   : > { %s2905_s25 = smov 128   ;;  %s2906_s14 = smov 8  }
 0x94b   : > { %2608 = dma.vmem_to_hbm [thread:$0]  (%p2973_p11), %s2008_s16, 512, %s2010_s20, %s1995_s28, %s2905_s25, %s2905_s25, %s2906_s14  }
 0x94c PF: > { %s2024_s26 = sand.u32 1, %s2884_s12   ;;  %p2621_p7 = pnand %p2128_p9, %p2977_p12 }
 0x94d   : > { %s2025_s9 = scalar_lea.sflag [#allocation4], %s2024_s26 }
 0x94e   : > { %p2622_p8 = pneg %p2621_p7 }
 0x950   : > { %2879 = dma.done.wait (%p2622_p8), %s2025_s9, 512  }
 0x951   : > { %2881 = vsyncadd (%p2622_p8), %s2025_s9, 4294966784  ;;  %s3596_s6 = sld [smem:[#allocation12_spill]]  ;;  %p19_p10 = scmp.ge.s32.totalorder %s2952_s18, 4  }
 0x952   : > { %s3597_s14 = sld [smem:[#allocation13_spill]]  ;;  %s3598_s12 = smov %s2888_s13 }
 0x953   : > { %s3600_s15 = smov %s2952_s18  ;;  %21 = sbr.rel (!%p19_p10) target bundleno = 9 (0x9), region = 101 }
 0x957   : > { %s3599_s13 = smov %s3596_s6 }
 0x958   :  { %2031 = vsyncpa [#allocation3], 1 }
 0x959   :  { %2033 = vsyncpa [#allocation3 + $0x1], 1 }
 0x95a   :  { %2034 = vsyncpa [#allocation6], 1 }
 0x95b   :  { %2036 = vsyncpa [#allocation6 + $0x1], 1 }
 0x95c   :  { %2037 = vsyncpa [#allocation4], 1 }
 0x95d   :  { %2039 = vsyncpa [#allocation4 + $0x1], 1 }

</bundles_post_ra>
